<compile_context>
chip_gen: v5e
topology: v5e:2x2
jax: 0.10.0
libtpu: 0.0.40
codegen_flags: <defaults>
</compile_context>

<pallas_src>
import functools

import jax
import jax.numpy as jnp
from jax import lax
from jax.experimental import pallas as pl
from jax.experimental.pallas import tpu as pltpu


def _attention_grid_kernel(x_ref, xs_ref, g_ref, psi_b_ref,
                           win_ref, wg_ref, psi_w_ref, mhw_ref, md_ref,
                           y_ref, w_ref, *, bb, hw_hi, inv_n):
    """One batch block (bb batch elements).

    x_ref    (bb, x_c, Dx, Hx*Wx)        full-res input, lane-dense
    xs_ref   (1, x_c*Dg, bb*Hg*Wg)       strided (+pad3d'ed) input, (chan,depth) rows,
                                         batch packed along lanes
    g_ref    (1, g_c*Dg + 1, bb*Hg*Wg)   gating signal + ones/mask row (bias fold)
    psi_b_ref (1,) SMEM                  psi bias scalar
    win_ref  (i_c*Dg, x_c*Dg)            kron(W_input, I_Dg)
    wg_ref   (i_c*Dg, g_c*Dg + 1)        [kron(W_gate, I_Dg) | masked bias column]
    psi_w_ref (Dg, i_c*Dg)               kron(w_psi, I_Dg)
    mhw_ref  (bb*Hg*Wg, bb*Hx*Wx)        kron(I_bb, kron(Mh, Mw))^T  (H & W interp)
    md_ref   (Dx, Dg)                    Md                          (D interp)
    y_ref    (bb, x_c, Dx, Hx*Wx)        out: InstanceNorm(x * w)
    w_ref    (bb, Dx, Hx*Wx)             out: attention map w
    """
    # ---- low-resolution gating path: 2-D matmuls, 128+ lanes, no reshapes -----
    a = jnp.dot(win_ref[...], xs_ref[0], preferred_element_type=jnp.float32)
    b = jnp.dot(wg_ref[...], g_ref[0], preferred_element_type=jnp.float32)  # bias+mask folded
    s = jnp.maximum(a + b, 0.0)                                             # relu
    psi = (jnp.dot(psi_w_ref[...], s, preferred_element_type=jnp.float32)
           + psi_b_ref[0])                                                  # (Dg, bb*hw_lo)
    w_small = 1.0 / (1.0 + jnp.exp(-psi))                                   # sigmoid

    # ---- separable trilinear upsample (all bb batches at once) ---------------
    t = jnp.dot(w_small, mhw_ref[...], preferred_element_type=jnp.float32)  # (Dg, bb*hw_hi)
    w_up = jnp.dot(md_ref[...], t, preferred_element_type=jnp.float32)      # (Dx, bb*hw_hi)

    # ---- per-batch gated product + InstanceNorm3d (affine=False, eps=1e-5) ----
    for bi in range(bb):
        w_b = w_up[:, bi * hw_hi:(bi + 1) * hw_hi]        # tile-aligned lane slice
        w_ref[bi] = w_b
        y_ref[bi] = x_ref[bi] * w_b[None, :, :]           # store product first
        yb = y_ref[bi]                                     # (x_c, Dx, hw_hi)
        s1 = jnp.sum(jnp.sum(yb, axis=2, keepdims=True), axis=1, keepdims=True)
        m = s1 * inv_n
        c = yb - m                                         # two-pass variance
        s2 = jnp.sum(jnp.sum(c * c, axis=2, keepdims=True), axis=1, keepdims=True)
        y_ref[bi] = c * lax.rsqrt(s2 * inv_n + 1e-5)


def _pad3d_to(v, target_spatial):
    """Centred zero-pad (or crop) of the last three dims, matching the spec's pad3d."""
    cfg = [(0, 0, 0)] * (v.ndim - 3)
    for i, t in enumerate(target_spatial):
        delta = int(t) - v.shape[v.ndim - 3 + i]
        front = -(-delta // 2)                       # ceil(delta / 2)
        cfg.append((front, delta - front, 0))
    return lax.pad(v, jnp.array(0.0, v.dtype), cfg)


def _linear_interp_matrix(out_size, in_size):
    """Matrix implementing F.interpolate(mode='linear', align_corners=False) along one axis."""
    dst = jnp.arange(out_size, dtype=jnp.float32)
    src = jnp.clip((dst + 0.5) * (in_size / out_size) - 0.5, 0.0, in_size - 1)
    i0f = jnp.floor(src)
    frac = src - i0f
    i0 = i0f.astype(jnp.int32)
    i1 = jnp.minimum(i0 + 1, in_size - 1)
    cols = jnp.arange(in_size, dtype=jnp.int32)
    return ((cols[None, :] == i0[:, None]) * (1.0 - frac)[:, None]
            + (cols[None, :] == i1[:, None]) * frac[:, None]).astype(jnp.float32)


def _const_spec(shape):
    """Full-array block whose index never changes (weights / interp matrices)."""
    n = len(shape)
    return pl.BlockSpec(shape, lambda b: (0,) * n)


@functools.partial(jax.jit, static_argnames=("stride", "batch_block"))
def attention_grid_forward(x, g, params, stride=2, batch_block=None):
    """Pallas forward of AttentionGrid; returns (y, w) like the PyTorch module."""
    w_in, w_gate, b_gate, w_psi, b_psi = params
    B, x_c, Dx, Hx, Wx = x.shape
    g_c = g.shape[1]
    i_c = w_in.shape[0]

    # input_filter is a 1x1x1 conv with stride and no bias == channel mix of the
    # strided subsample (subsample done wrapper-side: pure data movement).
    xs = x[:, :, ::stride, ::stride, ::stride]

    # pad3d: match the spatial shapes of a = conv(xs) and b = conv(g) + bias.
    a_sp, b_sp = xs.shape[2:], g.shape[2:]
    if a_sp[-1] < b_sp[-1]:
        tgt = b_sp
        xs = _pad3d_to(xs, tgt)                     # no bias => pad input == pad conv output
        mask_sp = jnp.ones(tgt, jnp.float32)
    elif a_sp[-1] > b_sp[-1]:
        tgt = a_sp
        g = _pad3d_to(g, tgt)                       # zero-pad g; bias killed in border via fold
        mask_sp = _pad3d_to(jnp.ones(b_sp, jnp.float32), tgt)
    else:
        tgt = a_sp
        mask_sp = jnp.ones(tgt, jnp.float32)
    if xs.shape[2:] != g.shape[2:]:
        raise ValueError(f"incompatible spatial shapes after pad3d: {xs.shape} vs {g.shape}")
    Dg, Hg, Wg = (int(v) for v in tgt)
    hw_lo, hw_hi = Hg * Wg, Hx * Wx

    # ---- batch blocking: fill the 128-lane vreg in the low-res path -----------
    # (on v7x with tiny batches pass batch_block=1 to keep >=2 grid steps for 2 TCs)
    if batch_block is None:
        want = max(1, -(-128 // hw_lo))             # batches needed for >=128 lanes
        bb = min(B, want)
        while B % bb:
            bb -= 1
    else:
        bb = int(batch_block)
        if B % bb:
            raise ValueError("batch_block must divide the batch size")
    nb = B // bb

    # ---- low-res stacks: (channel,depth) rows x (batch,H*W) lanes -------------
    def stack_lanes(v):                              # (B, C, Dg, Hg, Wg) -> (nb, C*Dg, bb*hw_lo)
        C = v.shape[1]
        v = v.reshape(nb, bb, C, Dg, hw_lo)
        v = jnp.transpose(v, (0, 2, 3, 1, 4))
        return v.reshape(nb, C * Dg, bb * hw_lo)

    xs_stack = stack_lanes(xs.astype(jnp.float32))
    g_stack = stack_lanes(g.astype(jnp.float32))

    # pad3d mask is a separable box: fold depth part into the bias column and
    # the H/W part into the appended ones-row (no mask operand, no extra mul).
    dvalid = jnp.max(mask_sp, axis=(1, 2))                         # (Dg,)
    hw_valid = jnp.max(mask_sp, axis=0).reshape(hw_lo)             # (hw_lo,)
    ones_row = jnp.broadcast_to(jnp.tile(hw_valid, bb)[None, None, :],
                                (nb, 1, bb * hw_lo))
    g_aug = jnp.concatenate([g_stack, ones_row], axis=1)           # (nb, g_c*Dg+1, bb*hw_lo)

    eye_d = jnp.eye(Dg, dtype=jnp.float32)
    win_k = jnp.kron(w_in.astype(jnp.float32), eye_d)              # (i_c*Dg, x_c*Dg)
    wg_k = jnp.kron(w_gate.astype(jnp.float32), eye_d)             # (i_c*Dg, g_c*Dg)
    bg_col = (jnp.repeat(b_gate.astype(jnp.float32), Dg)
              * jnp.tile(dvalid, i_c)).reshape(i_c * Dg, 1)
    wg_aug = jnp.concatenate([wg_k, bg_col], axis=1)               # (i_c*Dg, g_c*Dg+1)
    psi_k = jnp.kron(w_psi.reshape(1, i_c).astype(jnp.float32), eye_d)  # (Dg, i_c*Dg)
    psi_b = jnp.reshape(b_psi.astype(jnp.float32), (1,))           # SMEM scalar

    # Separable trilinear interpolation matrices (align_corners=False).
    # TODO(synk): at large Hg*Wg replace the kron by two per-axis matmuls.
    mhw_t = jnp.kron(_linear_interp_matrix(Hx, Hg), _linear_interp_matrix(Wx, Wg)).T
    mhw_bd = jnp.kron(jnp.eye(bb, dtype=jnp.float32), mhw_t)       # (bb*hw_lo, bb*hw_hi)
    md = _linear_interp_matrix(Dx, Dg)                             # (Dx, Dg)

    x_flat = x.astype(jnp.float32).reshape(B, x_c, Dx, hw_hi)      # lane-dense full-res view

    kernel = functools.partial(_attention_grid_kernel, bb=bb, hw_hi=hw_hi,
                               inv_n=1.0 / (Dx * Hx * Wx))
    y_flat, w_flat = pl.pallas_call(
        kernel,
        out_shape=(jax.ShapeDtypeStruct((B, x_c, Dx, hw_hi), jnp.float32),
                   jax.ShapeDtypeStruct((B, Dx, hw_hi), jnp.float32)),
        grid=(nb,),
        in_specs=[
            pl.BlockSpec((bb, x_c, Dx, hw_hi), lambda b: (b, 0, 0, 0)),
            pl.BlockSpec((1, x_c * Dg, bb * hw_lo), lambda b: (b, 0, 0)),
            pl.BlockSpec((1, g_c * Dg + 1, bb * hw_lo), lambda b: (b, 0, 0)),
            pl.BlockSpec(memory_space=pltpu.MemorySpace.SMEM),     # psi bias scalar
            _const_spec(win_k.shape),
            _const_spec(wg_aug.shape),
            _const_spec(psi_k.shape),
            _const_spec(mhw_bd.shape),
            _const_spec(md.shape),
        ],
        out_specs=(pl.BlockSpec((bb, x_c, Dx, hw_hi), lambda b: (b, 0, 0, 0)),
                   pl.BlockSpec((bb, Dx, hw_hi), lambda b: (b, 0, 0))),
        compiler_params=pltpu.CompilerParams(
            dimension_semantics=("parallel",),
            vmem_limit_bytes=32 * 1024 * 1024),
    )(x_flat, xs_stack, g_aug, psi_b, win_k, wg_aug, psi_k, mhw_bd, md)

    y = y_flat.reshape(B, x_c, Dx, Hx, Wx).astype(x.dtype)
    w = w_flat.reshape(B, 1, Dx, Hx, Wx)
    return y, w


def ref_forward(x, g, params, stride=2):
    """Pure-JAX reference of AttentionGrid.forward (eval mode)."""
    w_in, w_gate, b_gate, w_psi, b_psi = params

    def conv1(v, w, bias=None):
        out = jnp.einsum('oc,bcdhw->bodhw', w, v)
        if bias is not None:
            out = out + bias[None, :, None, None, None]
        return out

    a = conv1(x[:, :, ::stride, ::stride, ::stride], w_in)
    b = conv1(g, w_gate, b_gate)
    if a.shape[-1] < b.shape[-1]:
        a = _pad3d_to(a, b.shape[2:])
    elif a.shape[-1] > b.shape[-1]:
        b = _pad3d_to(b, a.shape[2:])
    s = jnp.maximum(a + b, 0.0)
    w_small = jax.nn.sigmoid(conv1(s, w_psi.reshape(1, -1), b_psi))

    # Trilinear upsample, align_corners=False (gather + lerp along each axis).
    out = w_small
    for axis, o in zip((2, 3, 4), x.shape[2:]):
        n = out.shape[axis]
        src = jnp.clip((jnp.arange(o, dtype=jnp.float32) + 0.5) * (n / o) - 0.5, 0.0, n - 1)
        i0 = jnp.floor(src).astype(jnp.int32)
        i1 = jnp.minimum(i0 + 1, n - 1)
        f = (src - i0.astype(jnp.float32)).reshape([o if ax == axis else 1
                                                    for ax in range(out.ndim)])
        out = jnp.take(out, i0, axis=axis) * (1.0 - f) + jnp.take(out, i1, axis=axis) * f
    w_up = out

    y = x * w_up
    m = y.mean(axis=(2, 3, 4), keepdims=True)
    var = ((y - m) ** 2).mean(axis=(2, 3, 4), keepdims=True)
    y = (y - m) / jnp.sqrt(var + 1e-5)
    return y, w_up


if __name__ == "__main__":
    B, x_c, g_c, i_c = 2, 4, 4, 8
    Sx, Sg, stride = 16, 8, 2           # x: (2, 4, 16, 16, 16); g: (2, 4, 8, 8, 8)

    key = jax.random.PRNGKey(0)
    keys = jax.random.split(key, 8)
    x = jax.random.normal(keys[0], (B, x_c, Sx, Sx, Sx), dtype=jnp.float32)
    g = jax.random.normal(keys[1], (B, g_c, Sg, Sg, Sg), dtype=jnp.float32)

    def init(k, shape, scale=0.3):
        return scale * jax.random.normal(k, shape, dtype=jnp.float32)

    params = (
        init(keys[2], (i_c, x_c)),      # input_filter: Conv3d k=1, stride=2, no bias
        init(keys[3], (i_c, g_c)),      # gate_filter:  Conv3d k=1, weight
        init(keys[4], (i_c,)),          # gate_filter:  bias
        init(keys[5], (i_c,)),          # psi:          Conv3d k=1 -> 1 channel, weight
        init(keys[6], (1,)),            # psi:          bias
    )

    y, w = attention_grid_forward(x, g, params, stride=stride)
    y = jax.block_until_ready(y)
    w = jax.block_until_ready(w)

    y_ref, w_ref = ref_forward(x, g, params, stride=stride)
    y_ref = jax.block_until_ready(y_ref)
    w_ref = jax.block_until_ready(w_ref)

    assert y.shape == x.shape and y.dtype == x.dtype
    assert w.shape == (B, 1, Sx, Sx, Sx)
    err_y = float(jnp.max(jnp.abs(y - y_ref)))
    err_w = float(jnp.max(jnp.abs(w - w_ref)))
    assert err_y < 1e-3 and err_w < 1e-3, f"mismatch vs reference: y={err_y}, w={err_w}"

    print("KERNEL_OK")
</pallas_src>

<mosaic_0001>
module attributes {stable_mosaic.version = 11 : i64} {
  func.func @_attention_grid_kernel(%arg0: i32, %arg1: memref<2x4x16x256xf32, #tpu.memory_space<vmem>>, %arg2: memref<1x32x128xf32, #tpu.memory_space<vmem>>, %arg3: memref<1x33x128xf32, #tpu.memory_space<vmem>>, %arg4: memref<1xf32, #tpu.memory_space<smem>>, %arg5: memref<64x32xf32, #tpu.memory_space<vmem>>, %arg6: memref<64x33xf32, #tpu.memory_space<vmem>>, %arg7: memref<8x64xf32, #tpu.memory_space<vmem>>, %arg8: memref<128x512xf32, #tpu.memory_space<vmem>>, %arg9: memref<16x8xf32, #tpu.memory_space<vmem>>, %arg10: memref<2x4x16x256xf32, #tpu.memory_space<vmem>>, %arg11: memref<2x16x256xf32, #tpu.memory_space<vmem>>) attributes {dimension_semantics = [#tpu.dimension_semantics<parallel>], iteration_bounds = array<i64: 1>, scalar_prefetch = 0 : i64, scratch_operands = 0 : i64, tpu.core_type = #tpu.core_type<tc>, window_params = [{transform_indices = @transform_0, window_bounds = array<i64: 2, 4, 16, 256>}, {transform_indices = @transform_1, window_bounds = array<i64: 1, 32, 128>}, {transform_indices = @transform_2, window_bounds = array<i64: 1, 33, 128>}, {transform_indices = @transform_3, window_bounds = array<i64: 1>}, {pipeline_mode = #tpu.pipeline_mode<synchronous>, transform_indices = @transform_4, window_bounds = array<i64: 64, 32>}, {pipeline_mode = #tpu.pipeline_mode<synchronous>, transform_indices = @transform_5, window_bounds = array<i64: 64, 33>}, {pipeline_mode = #tpu.pipeline_mode<synchronous>, transform_indices = @transform_6, window_bounds = array<i64: 8, 64>}, {pipeline_mode = #tpu.pipeline_mode<synchronous>, transform_indices = @transform_7, window_bounds = array<i64: 128, 512>}, {pipeline_mode = #tpu.pipeline_mode<synchronous>, transform_indices = @transform_8, window_bounds = array<i64: 16, 8>}, {transform_indices = @transform_9, window_bounds = array<i64: 2, 4, 16, 256>}, {transform_indices = @transform_10, window_bounds = array<i64: 2, 16, 256>}]} {
    %c0 = arith.constant 0 : index
    %c0_0 = arith.constant 0 : index
    %0 = vector.load %arg5[%c0, %c0_0] : memref<64x32xf32, #tpu.memory_space<vmem>>, vector<64x32xf32>
    %c0_1 = arith.constant 0 : index
    %c0_2 = arith.constant 0 : index
    %c0_3 = arith.constant 0 : index
    %1 = vector.load %arg2[%c0_1, %c0_2, %c0_3] : memref<1x32x128xf32, #tpu.memory_space<vmem>>, vector<1x32x128xf32>
    %2 = vector.shape_cast %1 : vector<1x32x128xf32> to vector<32x128xf32>
    %cst = arith.constant dense<0.000000e+00> : vector<64x128xf32>
    %3 = tpu.matmul %0, %2, %cst {dimension_numbers = #tpu.dot_dimension_numbers<[1], [0], [0], [1], [0, 0, 1, 1], [], []>} : vector<64x32xf32>, vector<32x128xf32>, vector<64x128xf32> -> vector<64x128xf32>
    %c0_4 = arith.constant 0 : index
    %c0_5 = arith.constant 0 : index
    %4 = vector.load %arg6[%c0_4, %c0_5] : memref<64x33xf32, #tpu.memory_space<vmem>>, vector<64x33xf32>
    %c0_6 = arith.constant 0 : index
    %c0_7 = arith.constant 0 : index
    %c0_8 = arith.constant 0 : index
    %5 = vector.load %arg3[%c0_6, %c0_7, %c0_8] : memref<1x33x128xf32, #tpu.memory_space<vmem>>, vector<1x33x128xf32>
    %6 = vector.shape_cast %5 : vector<1x33x128xf32> to vector<33x128xf32>
    %cst_9 = arith.constant dense<0.000000e+00> : vector<64x128xf32>
    %7 = tpu.matmul %4, %6, %cst_9 {dimension_numbers = #tpu.dot_dimension_numbers<[1], [0], [0], [1], [0, 0, 1, 1], [], []>} : vector<64x33xf32>, vector<33x128xf32>, vector<64x128xf32> -> vector<64x128xf32>
    %8 = arith.addf %3, %7 : vector<64x128xf32>
    %cst_10 = arith.constant 0.000000e+00 : f32
    %9 = vector.broadcast %cst_10 : f32 to vector<64x128xf32>
    %10 = arith.maximumf %8, %9 : vector<64x128xf32>
    %c0_11 = arith.constant 0 : index
    %c0_12 = arith.constant 0 : index
    %11 = vector.load %arg7[%c0_11, %c0_12] : memref<8x64xf32, #tpu.memory_space<vmem>>, vector<8x64xf32>
    %cst_13 = arith.constant dense<0.000000e+00> : vector<8x128xf32>
    %12 = tpu.matmul %11, %10, %cst_13 {dimension_numbers = #tpu.dot_dimension_numbers<[1], [0], [0], [1], [0, 0, 1, 1], [], []>} : vector<8x64xf32>, vector<64x128xf32>, vector<8x128xf32> -> vector<8x128xf32>
    %c0_14 = arith.constant 0 : index
    %13 = memref.load %arg4[%c0_14] : memref<1xf32, #tpu.memory_space<smem>>
    %14 = vector.broadcast %13 : f32 to vector<8x128xf32>
    %15 = arith.addf %12, %14 : vector<8x128xf32>
    %cst_15 = arith.constant 0.000000e+00 : f32
    %16 = vector.broadcast %cst_15 : f32 to vector<8x128xf32>
    %17 = arith.subf %16, %15 : vector<8x128xf32>
    %18 = math.exp %17 : vector<8x128xf32>
    %cst_16 = arith.constant 1.000000e+00 : f32
    %19 = vector.broadcast %cst_16 : f32 to vector<8x128xf32>
    %20 = arith.addf %19, %18 : vector<8x128xf32>
    %cst_17 = arith.constant 1.000000e+00 : f32
    %21 = vector.broadcast %cst_17 : f32 to vector<8x128xf32>
    %22 = arith.divf %21, %20 : vector<8x128xf32>
    %c0_18 = arith.constant 0 : index
    %c0_19 = arith.constant 0 : index
    %23 = vector.load %arg8[%c0_18, %c0_19] : memref<128x512xf32, #tpu.memory_space<vmem>>, vector<128x512xf32>
    %cst_20 = arith.constant dense<0.000000e+00> : vector<8x512xf32>
    %24 = tpu.matmul %22, %23, %cst_20 {dimension_numbers = #tpu.dot_dimension_numbers<[1], [0], [0], [1], [0, 0, 1, 1], [], []>} : vector<8x128xf32>, vector<128x512xf32>, vector<8x512xf32> -> vector<8x512xf32>
    %c0_21 = arith.constant 0 : index
    %c0_22 = arith.constant 0 : index
    %25 = vector.load %arg9[%c0_21, %c0_22] : memref<16x8xf32, #tpu.memory_space<vmem>>, vector<16x8xf32>
    %cst_23 = arith.constant dense<0.000000e+00> : vector<16x512xf32>
    %26 = tpu.matmul %25, %24, %cst_23 {dimension_numbers = #tpu.dot_dimension_numbers<[1], [0], [0], [1], [0, 0, 1, 1], [], []>} : vector<16x8xf32>, vector<8x512xf32>, vector<16x512xf32> -> vector<16x512xf32>
    %27 = vector.extract_strided_slice %26 {offsets = [0, 0], sizes = [16, 256], strides = [1, 1]} : vector<16x512xf32> to vector<16x256xf32>
    %c0_24 = arith.constant 0 : index
    %c0_25 = arith.constant 0 : index
    %c0_26 = arith.constant 0 : index
    %28 = vector.load %arg11[%c0_24, %c0_25, %c0_26] : memref<2x16x256xf32, #tpu.memory_space<vmem>>, vector<1x16x256xf32>
    %29 = vector.shape_cast %28 : vector<1x16x256xf32> to vector<16x256xf32>
    %30 = vector.shape_cast %27 : vector<16x256xf32> to vector<1x16x256xf32>
    tpu.vector_store %arg11[%c0_24, %c0_25, %c0_26], %30 {strides = array<i32>} : memref<2x16x256xf32, #tpu.memory_space<vmem>>, vector<1x16x256xf32>,
    %c0_27 = arith.constant 0 : index
    %c0_28 = arith.constant 0 : index
    %c0_29 = arith.constant 0 : index
    %c0_30 = arith.constant 0 : index
    %31 = vector.load %arg1[%c0_27, %c0_28, %c0_29, %c0_30] : memref<2x4x16x256xf32, #tpu.memory_space<vmem>>, vector<1x4x16x256xf32>
    %32 = vector.shape_cast %31 : vector<1x4x16x256xf32> to vector<4x16x256xf32>
    %33 = vector.shape_cast %27 : vector<16x256xf32> to vector<1x16x256xf32>
    %34 = vector.broadcast %33 : vector<1x16x256xf32> to vector<4x16x256xf32>
    %35 = arith.mulf %32, %34 : vector<4x16x256xf32>
    %c0_31 = arith.constant 0 : index
    %c0_32 = arith.constant 0 : index
    %c0_33 = arith.constant 0 : index
    %c0_34 = arith.constant 0 : index
    %36 = vector.load %arg10[%c0_31, %c0_32, %c0_33, %c0_34] : memref<2x4x16x256xf32, #tpu.memory_space<vmem>>, vector<1x4x16x256xf32>
    %37 = vector.shape_cast %36 : vector<1x4x16x256xf32> to vector<4x16x256xf32>
    %38 = vector.shape_cast %35 : vector<4x16x256xf32> to vector<1x4x16x256xf32>
    tpu.vector_store %arg10[%c0_31, %c0_32, %c0_33, %c0_34], %38 {strides = array<i32>} : memref<2x4x16x256xf32, #tpu.memory_space<vmem>>, vector<1x4x16x256xf32>,
    %c0_35 = arith.constant 0 : index
    %c0_36 = arith.constant 0 : index
    %c0_37 = arith.constant 0 : index
    %c0_38 = arith.constant 0 : index
    %39 = vector.load %arg10[%c0_35, %c0_36, %c0_37, %c0_38] : memref<2x4x16x256xf32, #tpu.memory_space<vmem>>, vector<1x4x16x256xf32>
    %40 = vector.shape_cast %39 : vector<1x4x16x256xf32> to vector<4x16x256xf32>
    %cst_39 = arith.constant dense<0.000000e+00> : vector<4x16xf32>
    %41 = vector.multi_reduction <add>, %40, %cst_39 [2] : vector<4x16x256xf32> to vector<4x16xf32>
    %42 = vector.shape_cast %41 : vector<4x16xf32> to vector<4x16x1xf32>
    %cst_40 = arith.constant dense<0.000000e+00> : vector<4x1xf32>
    %43 = vector.multi_reduction <add>, %42, %cst_40 [1] : vector<4x16x1xf32> to vector<4x1xf32>
    %44 = vector.shape_cast %43 : vector<4x1xf32> to vector<4x1x1xf32>
    %cst_41 = arith.constant 2.44140625E-4 : f32
    %45 = vector.broadcast %cst_41 : f32 to vector<4x1x1xf32>
    %46 = arith.mulf %44, %45 : vector<4x1x1xf32>
    %47 = vector.broadcast %46 : vector<4x1x1xf32> to vector<4x16x256xf32>
    %48 = arith.subf %40, %47 : vector<4x16x256xf32>
    %49 = arith.mulf %48, %48 : vector<4x16x256xf32>
    %cst_42 = arith.constant dense<0.000000e+00> : vector<4x16xf32>
    %50 = vector.multi_reduction <add>, %49, %cst_42 [2] : vector<4x16x256xf32> to vector<4x16xf32>
    %51 = vector.shape_cast %50 : vector<4x16xf32> to vector<4x16x1xf32>
    %cst_43 = arith.constant dense<0.000000e+00> : vector<4x1xf32>
    %52 = vector.multi_reduction <add>, %51, %cst_43 [1] : vector<4x16x1xf32> to vector<4x1xf32>
    %53 = vector.shape_cast %52 : vector<4x1xf32> to vector<4x1x1xf32>
    %cst_44 = arith.constant 2.44140625E-4 : f32
    %54 = vector.broadcast %cst_44 : f32 to vector<4x1x1xf32>
    %55 = arith.mulf %53, %54 : vector<4x1x1xf32>
    %cst_45 = arith.constant 9.99999974E-6 : f32
    %56 = vector.broadcast %cst_45 : f32 to vector<4x1x1xf32>
    %57 = arith.addf %55, %56 : vector<4x1x1xf32>
    %58 = math.rsqrt %57 : vector<4x1x1xf32>
    %59 = vector.broadcast %58 : vector<4x1x1xf32> to vector<4x16x256xf32>
    %60 = arith.mulf %48, %59 : vector<4x16x256xf32>
    %c0_46 = arith.constant 0 : index
    %c0_47 = arith.constant 0 : index
    %c0_48 = arith.constant 0 : index
    %c0_49 = arith.constant 0 : index
    %61 = vector.load %arg10[%c0_46, %c0_47, %c0_48, %c0_49] : memref<2x4x16x256xf32, #tpu.memory_space<vmem>>, vector<1x4x16x256xf32>
    %62 = vector.shape_cast %61 : vector<1x4x16x256xf32> to vector<4x16x256xf32>
    %63 = vector.shape_cast %60 : vector<4x16x256xf32> to vector<1x4x16x256xf32>
    tpu.vector_store %arg10[%c0_46, %c0_47, %c0_48, %c0_49], %63 {strides = array<i32>} : memref<2x4x16x256xf32, #tpu.memory_space<vmem>>, vector<1x4x16x256xf32>,
    %64 = vector.extract_strided_slice %26 {offsets = [0, 256], sizes = [16, 256], strides = [1, 1]} : vector<16x512xf32> to vector<16x256xf32>
    %c1 = arith.constant 1 : index
    %c0_50 = arith.constant 0 : index
    %c0_51 = arith.constant 0 : index
    %65 = vector.load %arg11[%c1, %c0_50, %c0_51] : memref<2x16x256xf32, #tpu.memory_space<vmem>>, vector<1x16x256xf32>
    %66 = vector.shape_cast %65 : vector<1x16x256xf32> to vector<16x256xf32>
    %67 = vector.shape_cast %64 : vector<16x256xf32> to vector<1x16x256xf32>
    tpu.vector_store %arg11[%c1, %c0_50, %c0_51], %67 {strides = array<i32>} : memref<2x16x256xf32, #tpu.memory_space<vmem>>, vector<1x16x256xf32>,
    %c1_52 = arith.constant 1 : index
    %c0_53 = arith.constant 0 : index
    %c0_54 = arith.constant 0 : index
    %c0_55 = arith.constant 0 : index
    %68 = vector.load %arg1[%c1_52, %c0_53, %c0_54, %c0_55] : memref<2x4x16x256xf32, #tpu.memory_space<vmem>>, vector<1x4x16x256xf32>
    %69 = vector.shape_cast %68 : vector<1x4x16x256xf32> to vector<4x16x256xf32>
    %70 = vector.shape_cast %64 : vector<16x256xf32> to vector<1x16x256xf32>
    %71 = vector.broadcast %70 : vector<1x16x256xf32> to vector<4x16x256xf32>
    %72 = arith.mulf %69, %71 : vector<4x16x256xf32>
    %c1_56 = arith.constant 1 : index
    %c0_57 = arith.constant 0 : index
    %c0_58 = arith.constant 0 : index
    %c0_59 = arith.constant 0 : index
    %73 = vector.load %arg10[%c1_56, %c0_57, %c0_58, %c0_59] : memref<2x4x16x256xf32, #tpu.memory_space<vmem>>, vector<1x4x16x256xf32>
    %74 = vector.shape_cast %73 : vector<1x4x16x256xf32> to vector<4x16x256xf32>
    %75 = vector.shape_cast %72 : vector<4x16x256xf32> to vector<1x4x16x256xf32>
    tpu.vector_store %arg10[%c1_56, %c0_57, %c0_58, %c0_59], %75 {strides = array<i32>} : memref<2x4x16x256xf32, #tpu.memory_space<vmem>>, vector<1x4x16x256xf32>,
    %c1_60 = arith.constant 1 : index
    %c0_61 = arith.constant 0 : index
    %c0_62 = arith.constant 0 : index
    %c0_63 = arith.constant 0 : index
    %76 = vector.load %arg10[%c1_60, %c0_61, %c0_62, %c0_63] : memref<2x4x16x256xf32, #tpu.memory_space<vmem>>, vector<1x4x16x256xf32>
    %77 = vector.shape_cast %76 : vector<1x4x16x256xf32> to vector<4x16x256xf32>
    %cst_64 = arith.constant dense<0.000000e+00> : vector<4x16xf32>
    %78 = vector.multi_reduction <add>, %77, %cst_64 [2] : vector<4x16x256xf32> to vector<4x16xf32>
    %79 = vector.shape_cast %78 : vector<4x16xf32> to vector<4x16x1xf32>
    %cst_65 = arith.constant dense<0.000000e+00> : vector<4x1xf32>
    %80 = vector.multi_reduction <add>, %79, %cst_65 [1] : vector<4x16x1xf32> to vector<4x1xf32>
    %81 = vector.shape_cast %80 : vector<4x1xf32> to vector<4x1x1xf32>
    %cst_66 = arith.constant 2.44140625E-4 : f32
    %82 = vector.broadcast %cst_66 : f32 to vector<4x1x1xf32>
    %83 = arith.mulf %81, %82 : vector<4x1x1xf32>
    %84 = vector.broadcast %83 : vector<4x1x1xf32> to vector<4x16x256xf32>
    %85 = arith.subf %77, %84 : vector<4x16x256xf32>
    %86 = arith.mulf %85, %85 : vector<4x16x256xf32>
    %cst_67 = arith.constant dense<0.000000e+00> : vector<4x16xf32>
    %87 = vector.multi_reduction <add>, %86, %cst_67 [2] : vector<4x16x256xf32> to vector<4x16xf32>
    %88 = vector.shape_cast %87 : vector<4x16xf32> to vector<4x16x1xf32>
    %cst_68 = arith.constant dense<0.000000e+00> : vector<4x1xf32>
    %89 = vector.multi_reduction <add>, %88, %cst_68 [1] : vector<4x16x1xf32> to vector<4x1xf32>
    %90 = vector.shape_cast %89 : vector<4x1xf32> to vector<4x1x1xf32>
    %cst_69 = arith.constant 2.44140625E-4 : f32
    %91 = vector.broadcast %cst_69 : f32 to vector<4x1x1xf32>
    %92 = arith.mulf %90, %91 : vector<4x1x1xf32>
    %cst_70 = arith.constant 9.99999974E-6 : f32
    %93 = vector.broadcast %cst_70 : f32 to vector<4x1x1xf32>
    %94 = arith.addf %92, %93 : vector<4x1x1xf32>
    %95 = math.rsqrt %94 : vector<4x1x1xf32>
    %96 = vector.broadcast %95 : vector<4x1x1xf32> to vector<4x16x256xf32>
    %97 = arith.mulf %85, %96 : vector<4x16x256xf32>
    %c1_71 = arith.constant 1 : index
    %c0_72 = arith.constant 0 : index
    %c0_73 = arith.constant 0 : index
    %c0_74 = arith.constant 0 : index
    %98 = vector.load %arg10[%c1_71, %c0_72, %c0_73, %c0_74] : memref<2x4x16x256xf32, #tpu.memory_space<vmem>>, vector<1x4x16x256xf32>
    %99 = vector.shape_cast %98 : vector<1x4x16x256xf32> to vector<4x16x256xf32>
    %100 = vector.shape_cast %97 : vector<4x16x256xf32> to vector<1x4x16x256xf32>
    tpu.vector_store %arg10[%c1_71, %c0_72, %c0_73, %c0_74], %100 {strides = array<i32>} : memref<2x4x16x256xf32, #tpu.memory_space<vmem>>, vector<1x4x16x256xf32>,
    return
  }
  func.func @transform_0(%arg0: i32) -> (i32, i32, i32, i32) {
    %c0_i32 = arith.constant 0 : i32
    %c0_i32_0 = arith.constant 0 : i32
    %c0_i32_1 = arith.constant 0 : i32
    %c0_i32_2 = arith.constant 0 : i32
    return %arg0, %c0_i32, %c0_i32_0, %c0_i32_1 : i32, i32, i32, i32
  }
  func.func @transform_1(%arg0: i32) -> (i32, i32, i32) {
    %c0_i32 = arith.constant 0 : i32
    %c0_i32_0 = arith.constant 0 : i32
    %c0_i32_1 = arith.constant 0 : i32
    return %arg0, %c0_i32, %c0_i32_0 : i32, i32, i32
  }
  func.func @transform_2(%arg0: i32) -> (i32, i32, i32) {
    %c0_i32 = arith.constant 0 : i32
    %c0_i32_0 = arith.constant 0 : i32
    %c0_i32_1 = arith.constant 0 : i32
    return %arg0, %c0_i32, %c0_i32_0 : i32, i32, i32
  }
  func.func @transform_3(%arg0: i32) -> i32 {
    %c0_i32 = arith.constant 0 : i32
    %c0_i32_0 = arith.constant 0 : i32
    return %c0_i32 : i32
  }
  func.func @transform_4(%arg0: i32) -> (i32, i32) {
    %c0_i32 = arith.constant 0 : i32
    %c0_i32_0 = arith.constant 0 : i32
    %c0_i32_1 = arith.constant 0 : i32
    return %c0_i32, %c0_i32_0 : i32, i32
  }
  func.func @transform_5(%arg0: i32) -> (i32, i32) {
    %c0_i32 = arith.constant 0 : i32
    %c0_i32_0 = arith.constant 0 : i32
    %c0_i32_1 = arith.constant 0 : i32
    return %c0_i32, %c0_i32_0 : i32, i32
  }
  func.func @transform_6(%arg0: i32) -> (i32, i32) {
    %c0_i32 = arith.constant 0 : i32
    %c0_i32_0 = arith.constant 0 : i32
    %c0_i32_1 = arith.constant 0 : i32
    return %c0_i32, %c0_i32_0 : i32, i32
  }
  func.func @transform_7(%arg0: i32) -> (i32, i32) {
    %c0_i32 = arith.constant 0 : i32
    %c0_i32_0 = arith.constant 0 : i32
    %c0_i32_1 = arith.constant 0 : i32
    return %c0_i32, %c0_i32_0 : i32, i32
  }
  func.func @transform_8(%arg0: i32) -> (i32, i32) {
    %c0_i32 = arith.constant 0 : i32
    %c0_i32_0 = arith.constant 0 : i32
    %c0_i32_1 = arith.constant 0 : i32
    return %c0_i32, %c0_i32_0 : i32, i32
  }
  func.func @transform_9(%arg0: i32) -> (i32, i32, i32, i32) {
    %c0_i32 = arith.constant 0 : i32
    %c0_i32_0 = arith.constant 0 : i32
    %c0_i32_1 = arith.constant 0 : i32
    %c0_i32_2 = arith.constant 0 : i32
    return %arg0, %c0_i32, %c0_i32_0, %c0_i32_1 : i32, i32, i32, i32
  }
  func.func @transform_10(%arg0: i32) -> (i32, i32, i32) {
    %c0_i32 = arith.constant 0 : i32
    %c0_i32_0 = arith.constant 0 : i32
    %c0_i32_1 = arith.constant 0 : i32
    return %arg0, %c0_i32, %c0_i32_0 : i32, i32, i32
  }
}

</mosaic_0001>

<bundles_post_ra>
// kernel: attention_grid_forward.1
= control target key start
LH: loop header
LB: loop body
LE: loop exit
PB: predicated region body
PF: predicated region fallthrough
CT: control target
= control target key end

     0   :  { %vm85_vm0 = vcmask 1040384   ;;  %vm130_vm1 = vcmask 261120   ;;  %vm60_vm2 = vcmask 269312   ;;  %vm207_vm3 = vcmask 523264   ;;  %s2121_s2 = inlined_call_operand.vmem [shape: f32[1,33,128], index: 2, kind: input, shape index: {}]   ;;  %s2122_s1 = inlined_call_operand.vmem [shape: f32[1,32,128], index: 1, kind: input, shape index: {}]   ;;  %s2123_s4 = inlined_call_operand.vmem [shape: f32[64,32], index: 4, kind: input, shape index: {}]   ;;  %s2124_s5 = inlined_call_operand.vmem [shape: f32[64,33], index: 5, kind: input, shape index: {}]   ;;  %s2125_s7 = inlined_call_operand.vmem [shape: f32[128,512], index: 7, kind: input, shape index: {}]   ;;  %s2126_s6 = inlined_call_operand.vmem [shape: f32[8,64], index: 6, kind: input, shape index: {}]   ;;  %s2127_s3 = inlined_call_operand.<no memory space> [shape: f32[1], index: 3, kind: input, shape index: {}]   ;;  %s2128_s8 = inlined_call_operand.vmem [shape: f32[16,8], index: 8, kind: input, shape index: {}]   ;;  %s2129_s10 = inlined_call_operand.vmem [shape: f32[2,16,256], index: 10, kind: output, shape index: {1}]   ;;  %s2130_s0 = inlined_call_operand.vmem [shape: f32[2,4,16,256], index: 0, kind: input, shape index: {}]   ;;  %s2131_s9 = inlined_call_operand.vmem [shape: f32[2,4,16,256], index: 9, kind: output, shape index: {0}]  }
   0x1   :  { %v59_v0 = vld [vmem:[%s2121_s2 + $0x20] sm:$0x1]  ;;  %v58_v1 = vld [vmem:[%s2121_s2 + $0x18] sm:$0xff]  ;;  %v45_v3 = vld [vmem:[%s2122_s1 + $0x10] sm:$0xff]  ;;  %vm396_vm8 = vcmask 64512  }
   0x2   :  { %v46_v2 = vld [vmem:[%s2122_s1 + $0x18] sm:$0xff]  ;;  %1082 = vmatpush.msk.msra.mxu0 %vm85_vm0, %v59_v0  ;;  %v57_v4 = vld [vmem:[%s2121_s2 + $0x10] sm:$0xff]  ;;  %v44_v5 = vld [vmem:[%s2122_s1 + $0x8] sm:$0xff] }
   0x3   :  { %167 = vmatpush.msra.mxu1 %v46_v2  ;;  %v56_v6 = vld [vmem:[%s2121_s2 + $0x8] sm:$0xff]  ;;  %v43_v7 = vld [vmem:[%s2122_s1] sm:$0xff]  ;;  %v37_v13 = vld [vmem:[%s2123_s4 + $0x10] sm:$0xff] }
   0x4   :  { %101 = vmatpush.msra.mxu0 %v58_v1  ;;  %v35_v8 = vld [vmem:[%s2123_s4] sm:$0xff]  ;;  %v36_v11 = vld [vmem:[%s2123_s4 + $0x8] sm:$0xff]  ;;  %v49_v14 = vld [vmem:[%s2124_s5 + $0x10] sm:$0xff] }
   0x5   :  { %168 = vmatpush.msra.mxu1 %v45_v3  ;;  %v55_v9 = vld [vmem:[%s2121_s2] sm:$0xff]  ;;  %v48_v12 = vld [vmem:[%s2124_s5 + $0x8] sm:$0xff]  ;;  %v38_v15 = vld [vmem:[%s2123_s4 + $0x18] sm:$0xff] }
   0x6   :  { %102 = vmatpush.msra.mxu0 %v57_v4  ;;  %v47_v10 = vld [vmem:[%s2124_s5] sm:$0xff]  ;;  %v50_v16 = vld [vmem:[%s2124_s5 + $0x18] sm:$0xff]  ;;  %v40_v19 = vld [vmem:[%s2123_s4 + $0x28] sm:$0xff] }
   0x7   :  { %169 = vmatpush.msra.mxu1 %v44_v5  ;;  %v39_v17 = vld [vmem:[%s2123_s4 + $0x20] sm:$0xff]  ;;  %v52_v20 = vld [vmem:[%s2124_s5 + $0x28] sm:$0xff]  ;;  %v41_v21 = vld [vmem:[%s2123_s4 + $0x30] sm:$0xff] }
   0x8   :  { %103 = vmatpush.msra.mxu0 %v56_v6  ;;  %v51_v18 = vld [vmem:[%s2124_s5 + $0x20] sm:$0xff]  ;;  %v53_v22 = vld [vmem:[%s2124_s5 + $0x30] sm:$0xff]  ;;  %v42_v23 = vld [vmem:[%s2123_s4 + $0x38] sm:$0xff] }
   0x9   :  { %170 = vmatpush.msra.mxu1 %v43_v7  ;;  %v54_v24 = vld [vmem:[%s2124_s5 + $0x38] sm:$0xff]  ;;  %v310_v38 = vld [vmem:[%s2125_s7 + $0x1e0] sm:$0xff]  ;;  %v311_v6 = vld [vmem:[%s2125_s7 + $0x1e8] sm:$0xff] }
   0xa   :  { %1091 = vmatmul.msk.f32.vlgmr.msra.gmra.mxu1 %vm130_vm1, %v35_v8  ;;  %104 = vmatpush.msra.mxu0 %v55_v9  ;;  %v306_v39 = vld [vmem:[%s2125_s7 + $0x1c0] sm:$0xff]  ;;  %v313_v7 = vld [vmem:[%s2125_s7 + $0x1f8] sm:$0xff]  ;;  %v307_v9 = vld [vmem:[%s2125_s7 + $0x1c8] sm:$0xff] }
   0xb   :  { %1083 = vmatmul.msk.f32.vlgmr.msra.gmra.mxu0 %vm60_vm2, %v47_v10  ;;  %314 = vmatpush.msra.mxu3 %v310_v38  ;;  %v302_v41 = vld [vmem:[%s2125_s7 + $0x1a0] sm:$0xff]  ;;  %v309_v10 = vld [vmem:[%s2125_s7 + $0x1d8] sm:$0xff] }
   0xc   :  { %v298_v43 = vld [vmem:[%s2125_s7 + $0x180] sm:$0xff]  ;;  %374 = vmatpush.msrb.mxu1 %v313_v7  ;;  %v273_v38 = vld [vmem:[%s2125_s7 + $0xb8] sm:$0xff] }
   0xd   :  { %315 = vmatpush.msra.mxu3 %v306_v39  ;;  %v294_v44 = vld [vmem:[%s2125_s7 + $0x160] sm:$0xff]  ;;  %v267_v39 = vld [vmem:[%s2125_s7 + $0x88] sm:$0xff] }
   0xe   :  { %v290_v45 = vld [vmem:[%s2125_s7 + $0x140] sm:$0xff]  ;;  %375 = vmatpush.msrb.mxu1 %v309_v10 }
   0xf   :  { %316 = vmatpush.msra.mxu3 %v302_v41  ;;  %v286_v47 = vld [vmem:[%s2125_s7 + $0x120] sm:$0xff]  ;;  %v269_v41 = vld [vmem:[%s2125_s7 + $0x98] sm:$0xff] }
  0x10   :  { %v282_v49 = vld [vmem:[%s2125_s7 + $0x100] sm:$0xff] }
  0x11   :  { %317 = vmatpush.msra.mxu3 %v298_v43  ;;  %v278_v52 = vld [vmem:[%s2125_s7 + $0xe0] sm:$0xff]  ;;  %v280_v43 = vld [vmem:[%s2125_s7 + $0xf0] sm:$0xff] }
  0x12   :  { %1092 = vmatmul.msk.f32.gmra.mxu1 %vm130_vm1, %v36_v11  ;;  %v274_v55 = vld [vmem:[%s2125_s7 + $0xc0] sm:$0xff] }
  0x13   :  { %1084 = vmatmul.msk.f32.gmra.mxu0 %vm60_vm2, %v48_v12  ;;  %318 = vmatpush.msra.mxu3 %v294_v44  ;;  %v270_v58 = vld [vmem:[%s2125_s7 + $0xa0] sm:$0xff]  ;;  %v303_v12 = vld [vmem:[%s2125_s7 + $0x1a8] sm:$0xff]  ;;  %v265_v44 = vld [vmem:[%s2125_s7 + $0x78] sm:$0xff] }
  0x14   :  { %v204_v4 = vld [vmem:[%s2126_s6] sm:$0xff] }
  0x15   :  { %319 = vmatpush.msra.mxu3 %v290_v45  ;;  %v266_v5 = vld [vmem:[%s2125_s7 + $0x80] sm:$0xff]  ;;  %v259_v45 = vld [vmem:[%s2125_s7 + $0x48] sm:$0xff] }
  0x16   :  { %v262_v8 = vld [vmem:[%s2125_s7 + $0x60] sm:$0xff] }
  0x17   :  { %320 = vmatpush.msra.mxu3 %v286_v47  ;;  %v258_v11 = vld [vmem:[%s2125_s7 + $0x40] sm:$0xff]  ;;  %v261_v47 = vld [vmem:[%s2125_s7 + $0x58] sm:$0xff] }
  0x19   :  { %321 = vmatpush.msra.mxu3 %v282_v49  ;;  %v272_v49 = vld [vmem:[%s2125_s7 + $0xb0] sm:$0xff] }
  0x1a   :  { %1093 = vmatmul.msk.f32.gmra.mxu1 %vm130_vm1, %v37_v13  ;;  %v305_v13 = vld [vmem:[%s2125_s7 + $0x1b8] sm:$0xff] }
  0x1b   :  { %1085 = vmatmul.msk.f32.gmra.mxu0 %vm60_vm2, %v49_v14  ;;  %322 = vmatpush.msra.mxu3 %v278_v52  ;;  %v254_v14 = vld [vmem:[%s2125_s7 + $0x20] sm:$0xff]  ;;  %v268_v52 = vld [vmem:[%s2125_s7 + $0x90] sm:$0xff] }
  0x1c   :  { %376 = vmatpush.msrb.mxu1 %v305_v13  ;;  %v395_v13 = vld [vmem:[%s2128_s8 + $0x8] sm:$0xff] }
  0x1d   :  { %323 = vmatpush.msra.mxu3 %v274_v55 }
  0x1f   :  { %324 = vmatpush.msra.mxu3 %v270_v58  ;;  %v260_v58 = vld [vmem:[%s2125_s7 + $0x50] sm:$0xff] }
  0x21   :  { %325 = vmatpush.msra.mxu3 %v266_v5 }
  0x22   :  { %1094 = vmatmul.msk.f32.gmra.mxu1 %vm130_vm1, %v38_v15  ;;  %v299_v15 = vld [vmem:[%s2125_s7 + $0x188] sm:$0xff] }
  0x23   :  { %1086 = vmatmul.msk.f32.gmra.mxu0 %vm60_vm2, %v50_v16  ;;  %326 = vmatpush.msra.mxu3 %v262_v8  ;;  %v301_v16 = vld [vmem:[%s2125_s7 + $0x198] sm:$0xff] }
  0x24   :  { %377 = vmatpush.msrb.mxu1 %v301_v16 }
  0x25   :  { %327 = vmatpush.msra.mxu3 %v258_v11 }
  0x27   :  { %328 = vmatpush.msra.mxu3 %v254_v14 }
  0x2a   :  { %1095 = vmatmul.msk.f32.gmra.mxu1 %vm130_vm1, %v39_v17  ;;  %v250_v17 = vld [vmem:[%s2125_s7] sm:$0xff] }
  0x2b   :  { %1087 = vmatmul.msk.f32.gmra.mxu0 %vm60_vm2, %v51_v18  ;;  %329 = vmatpush.msra.mxu3 %v250_v17  ;;  %v295_v18 = vld [vmem:[%s2125_s7 + $0x168] sm:$0xff] }
  0x32   :  { %1096 = vmatmul.msk.f32.gmra.mxu1 %vm130_vm1, %v40_v19  ;;  %v312_v19 = vld [vmem:[%s2125_s7 + $0x1f0] sm:$0xff] }
  0x33   :  { %1088 = vmatmul.msk.f32.gmra.mxu0 %vm60_vm2, %v52_v20  ;;  %v297_v20 = vld [vmem:[%s2125_s7 + $0x178] sm:$0xff]  ;;  %354 = vmatpush.msrb.mxu3 %v312_v19 }
  0x34   :  { %378 = vmatpush.msrb.mxu1 %v297_v20  ;;  %v1113_v20 = vld [vmem:[%s2130_s0 + $0x88] sm:$0xff] }
  0x3a   :  { %1097 = vmatmul.msk.f32.gmra.mxu1 %vm130_vm1, %v41_v21  ;;  %v291_v21 = vld [vmem:[%s2125_s7 + $0x148] sm:$0xff] }
  0x3b   :  { %1089 = vmatmul.msk.f32.gmra.mxu0 %vm60_vm2, %v53_v22  ;;  %v308_v22 = vld [vmem:[%s2125_s7 + $0x1d0] sm:$0xff] }
  0x3c   :  { %355 = vmatpush.msrb.mxu3 %v308_v22  ;;  %v1121_v22 = vld [vmem:[%s2130_s0 + $0xc8] sm:$0xff] }
  0x42   :  { %1098 = vmatmul.msk.f32.gmra.mxu1 %vm130_vm1, %v42_v23  ;;  %v293_v23 = vld [vmem:[%s2125_s7 + $0x158] sm:$0xff] }
  0x43   :  { %1090 = vmatmul.msk.f32.gmra.mxu0 %vm60_vm2, %v54_v24  ;;  %379 = vmatpush.msrb.mxu1 %v293_v23  ;;  %v287_v24 = vld [vmem:[%s2125_s7 + $0x128] sm:$0xff]  ;;  %v1112_v23 = vld [vmem:[%s2130_s0 + $0x80] sm:$0xff] }
  0x87   :  { %v172_v25 = vpop.f32.mrf.mxu1 }
  0x88   :  { %v106_v26 = vpop.f32.mrf.mxu0 }
  0x89   :  { %v1343_v27 = vadd.f32 %v172_v25, %v106_v26  ;;  %v304_v25 = vld [vmem:[%s2125_s7 + $0x1b0] sm:$0xff]  ;;  %v289_v26 = vld [vmem:[%s2125_s7 + $0x138] sm:$0xff] }
  0x8a   :  { %356 = vmatpush.msrb.mxu3 %v304_v25  ;;  %380 = vmatpush.msrb.mxu1 %v289_v26  ;;  %v1120_v25 = vld [vmem:[%s2130_s0 + $0xc0] sm:$0xff] }
  0x8b   :  { %v196_v3 = vmax.f32 %v1343_v27, 0.0  ;;  %v283_v27 = vld [vmem:[%s2125_s7 + $0x108] sm:$0xff] }
  0x8f   :  { %v175_v28 = vpop.f32.mrf.mxu1 }
  0x90   :  { %v109_v29 = vpop.f32.mrf.mxu0 }
  0x91   :  { %v176_v63 = vadd.f32 %v175_v28, %v109_v29  ;;  %v300_v28 = vld [vmem:[%s2125_s7 + $0x190] sm:$0xff]  ;;  %v285_v29 = vld [vmem:[%s2125_s7 + $0x118] sm:$0xff] }
  0x92   :  { %357 = vmatpush.msrb.mxu3 %v300_v28  ;;  %381 = vmatpush.msrb.mxu1 %v285_v29 }
  0x93   :  { %v197_v2 = vmax.f32 %v176_v63, 0.0 }
  0x97   :  { %v178_v30 = vpop.f32.mrf.mxu1 }
  0x98   :  { %v112_v31 = vpop.f32.mrf.mxu0 }
  0x99   :  { %v179_v61 = vadd.f32 %v178_v30, %v112_v31  ;;  %v279_v30 = vld [vmem:[%s2125_s7 + $0xe8] sm:$0xff]  ;;  %v296_v31 = vld [vmem:[%s2125_s7 + $0x170] sm:$0xff] }
  0x9a   :  { %358 = vmatpush.msrb.mxu3 %v296_v31 }
  0x9b   :  { %v198_v1 = vmax.f32 %v179_v61, 0.0 }
  0x9f   :  { %v181_v32 = vpop.f32.mrf.mxu1 }
  0xa0   :  { %v115_v33 = vpop.f32.mrf.mxu0 }
  0xa1   :  { %v182_v59 = vadd.f32 %v181_v32, %v115_v33  ;;  %v281_v32 = vld [vmem:[%s2125_s7 + $0xf8] sm:$0xff]  ;;  %v275_v33 = vld [vmem:[%s2125_s7 + $0xc8] sm:$0xff] }
  0xa2   :  { %382 = vmatpush.msrb.mxu1 %v281_v32 }
  0xa3   :  { %v199_v0 = vmax.f32 %v182_v59, 0.0 }
  0xa7   :  { %v184_v34 = vpop.f32.mrf.mxu1 }
  0xa8   :  { %v118_v35 = vpop.f32.mrf.mxu0 }
  0xa9   :  { %v185_v56 = vadd.f32 %v184_v34, %v118_v35  ;;  %v292_v34 = vld [vmem:[%s2125_s7 + $0x150] sm:$0xff]  ;;  %v277_v35 = vld [vmem:[%s2125_s7 + $0xd8] sm:$0xff] }
  0xaa   :  { %359 = vmatpush.msrb.mxu3 %v292_v34  ;;  %383 = vmatpush.msrb.mxu1 %v277_v35 }
  0xab   :  { %v200_v62 = vmax.f32 %v185_v56, 0.0 }
  0xac   :  { %384 = vmatpush.msrb.mxu1 %v273_v38  ;;  %v503_v38 = vld [vmem:[%s2130_s0 + $0x20] sm:$0xff] }
  0xae   :  { %385 = vmatpush.msrb.mxu1 %v269_v41  ;;  %v504_v41 = vld [vmem:[%s2130_s0 + $0x28] sm:$0xff] }
  0xaf   :  { %v187_v36 = vpop.f32.mrf.mxu1 }
  0xb0   :  { %v121_v37 = vpop.f32.mrf.mxu0  ;;  %386 = vmatpush.msrb.mxu1 %v265_v44 }
  0xb1   :  { %v188_v53 = vadd.f32 %v187_v36, %v121_v37  ;;  %v271_v36 = vld [vmem:[%s2125_s7 + $0xa8] sm:$0xff]  ;;  %v288_v37 = vld [vmem:[%s2125_s7 + $0x130] sm:$0xff] }
  0xb2   :  { %360 = vmatpush.msrb.mxu3 %v288_v37  ;;  %387 = vmatpush.msrb.mxu1 %v261_v47  ;;  %v499_v37 = vld [vmem:[%s2130_s0] sm:$0xff] }
  0xb3   :  { %v201_v60 = vmax.f32 %v188_v53, 0.0  ;;  %v206_v53 = vstv %s2127_s3 }
  0xb7   :  { %v190_v40 = vpop.f32.mrf.mxu1 }
  0xb8   :  { %v124_v42 = vpop.f32.mrf.mxu0 }
  0xb9   :  { %v191_v50 = vadd.f32 %v190_v40, %v124_v42  ;;  %v284_v40 = vld [vmem:[%s2125_s7 + $0x110] sm:$0xff]  ;;  %v263_v42 = vld [vmem:[%s2125_s7 + $0x68] sm:$0xff] }
  0xba   :  { %361 = vmatpush.msrb.mxu3 %v284_v40  ;;  %v500_v40 = vld [vmem:[%s2130_s0 + $0x8] sm:$0xff] }
  0xbb   :  { %v202_v57 = vmax.f32 %v191_v50, 0.0  ;;  %v257_v50 = vld [vmem:[%s2125_s7 + $0x38] sm:$0xff] }
  0xbc   :  { %362 = vmatpush.msrb.mxu3 %v280_v43  ;;  %388 = vmatpush.msrb.mxu1 %v257_v50 }
  0xbf   :  { %v193_v46 = vpop.f32.mrf.mxu1 }
  0xc0   :  { %v127_v48 = vpop.f32.mrf.mxu0 }
  0xc1   :  { %v194_v51 = vadd.f32 %v193_v46, %v127_v48  ;;  %v276_v46 = vld [vmem:[%s2125_s7 + $0xd0] sm:$0xff]  ;;  %v255_v48 = vld [vmem:[%s2125_s7 + $0x28] sm:$0xff] }
  0xc2   :  { %363 = vmatpush.msrb.mxu3 %v276_v46 }
  0xc3   :  { %v203_v54 = vmax.f32 %v194_v51, 0.0  ;;  %v251_v51 = vld [vmem:[%s2125_s7 + $0x8] sm:$0xff] }
  0xc4   :  { %364 = vmatpush.msrb.mxu3 %v272_v49 }
  0xc5   :  { %219 = vmatpush.msra.mxu2 %v203_v54  ;;  %v253_v54 = vld [vmem:[%s2125_s7 + $0x18] sm:$0xff] }
  0xc6   :  { %365 = vmatpush.msrb.mxu3 %v268_v52  ;;  %389 = vmatpush.msrb.mxu1 %v253_v54  ;;  %v1118_v54 = vld [vmem:[%s2130_s0 + $0xb0] sm:$0xff] }
  0xc7   :  { %220 = vmatpush.msra.mxu2 %v202_v57  ;;  %v264_v57 = vld [vmem:[%s2125_s7 + $0x70] sm:$0xff] }
  0xc8   :  { %366 = vmatpush.msrb.mxu3 %v264_v57  ;;  %v505_v57 = vld [vmem:[%s2130_s0 + $0x30] sm:$0xff] }
  0xc9   :  { %221 = vmatpush.msra.mxu2 %v201_v60  ;;  %v256_v60 = vld [vmem:[%s2125_s7 + $0x30] sm:$0xff] }
  0xca   :  { %367 = vmatpush.msrb.mxu3 %v260_v58  ;;  %v506_v58 = vld [vmem:[%s2130_s0 + $0x38] sm:$0xff] }
  0xcb   :  { %222 = vmatpush.msra.mxu2 %v200_v62  ;;  %v252_v62 = vld [vmem:[%s2125_s7 + $0x10] sm:$0xff] }
  0xcc   :  { %368 = vmatpush.msrb.mxu3 %v256_v60 }
  0xcd   :  { %223 = vmatpush.msra.mxu2 %v199_v0 }
  0xce   :  { %369 = vmatpush.msrb.mxu3 %v252_v62 }
  0xcf   :  { %224 = vmatpush.msra.mxu2 %v198_v1 }
  0xd1   :  { %225 = vmatpush.msra.mxu2 %v197_v2 }
  0xd3   :  { %226 = vmatpush.msra.mxu2 %v196_v3 }
  0xd4   :  { %1099 = vmatmul.msk.f32.vlgmr.msra.gmra.mxu2 %vm207_vm3, %v204_v4 }
  0xd5   :  { %334 = vmatpush.msrb.mxu2 %v311_v6 }
  0xd7   :  { %335 = vmatpush.msrb.mxu2 %v307_v9 }
  0xd9   :  { %336 = vmatpush.msrb.mxu2 %v303_v12  ;;  %v394_v12 = vld [vmem:[%s2128_s8] sm:$0xff] }
  0xdb   :  { %337 = vmatpush.msrb.mxu2 %v299_v15 }
  0xdd   :  { %338 = vmatpush.msrb.mxu2 %v295_v18 }
  0xdf   :  { %339 = vmatpush.msrb.mxu2 %v291_v21  ;;  %v1117_v21 = vld [vmem:[%s2130_s0 + $0xa8] sm:$0xff] }
  0xe1   :  { %340 = vmatpush.msrb.mxu2 %v287_v24  ;;  %v1116_v24 = vld [vmem:[%s2130_s0 + $0xa0] sm:$0xff] }
  0xe3   :  { %341 = vmatpush.msrb.mxu2 %v283_v27 }
  0xe5   :  { %342 = vmatpush.msrb.mxu2 %v279_v30 }
  0xe7   :  { %343 = vmatpush.msrb.mxu2 %v275_v33 }
  0xe9   :  { %344 = vmatpush.msrb.mxu2 %v271_v36 }
  0xeb   :  { %345 = vmatpush.msrb.mxu2 %v267_v39  ;;  %v507_v39 = vld [vmem:[%s2130_s0 + $0x40] sm:$0xff] }
  0xed   :  { %346 = vmatpush.msrb.mxu2 %v263_v42  ;;  %v508_v42 = vld [vmem:[%s2130_s0 + $0x48] sm:$0xff] }
  0xef   :  { %347 = vmatpush.msrb.mxu2 %v259_v45 }
  0xf1   :  { %348 = vmatpush.msrb.mxu2 %v255_v48 }
  0xf3   :  { %349 = vmatpush.msrb.mxu2 %v251_v51 }
 0x157   :  { %v228_v55 = vpop.f32.mrf.mxu2 }
 0x158   :  { %v229_v56 = vadd.f32 %v228_v55, %v206_v53  ;;  %v1119_v55 = vld [vmem:[%s2130_s0 + $0xb8] sm:$0xff] }
 0x15a   :  { %v231_v59 = vsub.f32 0.0, %v229_v56  ;;  %v512_v56 = vld [vmem:[%s2130_s0 + $0x68] sm:$0xff] }
 0x15c   :  { %v232_v61 = vmul.f32 1.442695, %v231_v59  ;;  %v511_v59 = vld [vmem:[%s2130_s0 + $0x60] sm:$0xff] }
 0x15e   :  { %1177 = vpow2.f32 %v232_v61 }
 0x164   :  { %v1178_v63 = vpop.eup %1177 }
 0x165   :  { %v234_v0 = vadd.f32 1.0, %v1178_v63 }
 0x167   :  { %1179 = vrcp.f32 %v234_v0  ;;  %v246_v4 = vand.u32 2147483648, %v234_v0  ;;  %v244_v6 = vand.u32 2147483647, %v234_v0  ;;  %vm240_vm5 = vweird.f32 %v234_v0 }
 0x169   :  { %v247_v8 = vor.u32 1.1754944e-38, %v246_v4  ;;  %vm245_vm7 = vcmp.eq.f32.partialorder %v244_v6, 8.507059e+37  ;;  %v1115_v4 = vld [vmem:[%s2130_s0 + $0x98] sm:$0xff] }
 0x16d   :  { %v1180_v1 = vpop.eup %1179 }
 0x16e   :  { %v236_v2 = vmul.f32 %v1180_v1, %v234_v0  ;;  %vm241_vm4 = vweird.f32 %v1180_v1 }
 0x16f   :  { %vm242_vm6 = vmor %vm240_vm5, %vm241_vm4 }
 0x170   :  { %v237_v3 = vsub.f32 1.0, %v236_v2 }
 0x172   :  { %v238_v5 = vmul.f32 %v1180_v1, %v237_v3  ;;  %v1114_v3 = vld [vmem:[%s2130_s0 + $0x90] sm:$0xff] }
 0x174   :  { %v239_v7 = vadd.f32 %v1180_v1, %v238_v5 }
 0x176   :  { %v243_v9 = vsel %vm242_vm6, %v1180_v1, %v239_v7 }
 0x177   :  { %v248_v10 = vsel %vm245_vm7, %v247_v8, %v243_v9  ;;  %v514_v8 = vld [vmem:[%s2130_s0 + $0x78] sm:$0xff] }
 0x178   :  { %330 = vmatmul.f32.vlgmr.msra.gmra.mxu3 %v248_v10  ;;  %350 = vmatmul.f32.vlgmr.msrb.gmra.mxu2 %v248_v10  ;;  %v510_v9 = vld [vmem:[%s2130_s0 + $0x58] sm:$0xff] }
 0x179   :  { %390 = vmatmul.f32.vlgmr.msrb.gmra.mxu1 %v248_v10 }
 0x180   :  { %370 = vmatmul.f32.vlgmr.msrb.gmra.mxu3 %v248_v10 }
 0x1f6   :  { %v391_v11 = vpop.f32.mrf.mxu1 }
 0x1f7   :  { %487 = vmatpush.msrb.mxu0 %v391_v11  ;;  %1176 = vmatpush.msra.mxu1 %v391_v11 }
 0x1f8   :  { %1106 = vmatmul.msk.f32.vlgmr.msrb.gmra.mxu0 %vm396_vm8, %v394_v12  ;;  %1107 = vmatmul.msk.f32.vlgmr.msra.gmra.mxu1 %vm396_vm8, %v395_v13 }
 0x1fb   :  { %v331_v14 = vpop.f32.mrf.mxu3  ;;  %v351_v15 = vpop.f32.mrf.mxu2 }
 0x1fc   :  { %418 = vmatpush.msra.mxu2 %v331_v14 }
 0x1fd   :  { %1100 = vmatmul.msk.f32.vlgmr.msra.gmra.mxu2 %vm396_vm8, %v394_v12 }
 0x1fe   :  { %441 = vmatpush.msrb.mxu2 %v351_v15 }
 0x203   :  { %v371_v16 = vpop.f32.mrf.mxu3 }
 0x204   :  { %464 = vmatpush.msra.mxu3 %v371_v16 }
 0x205   :  { %1101 = vmatmul.msk.f32.gmra.mxu2 %vm396_vm8, %v395_v13  ;;  %1104 = vmatmul.msk.f32.vlgmr.msra.gmra.mxu3 %vm396_vm8, %v394_v12 }
 0x20d   :  { %1102 = vmatmul.msk.f32.vlgmr.msrb.gmra.mxu2 %vm396_vm8, %v394_v12  ;;  %1105 = vmatmul.msk.f32.gmra.mxu3 %vm396_vm8, %v395_v13  ;;  %v513_v12 = vld [vmem:[%s2130_s0 + $0x70] sm:$0xff] }
 0x215   :  { %1103 = vmatmul.msk.f32.gmra.mxu2 %vm396_vm8, %v395_v13  ;;  %v509_v13 = vld [vmem:[%s2130_s0 + $0x50] sm:$0xff] }
 0x275   :  { %v1550_v17 = vpop.f32.mrf.mxu0  ;;  %v1556_v18 = vpop.f32.mrf.mxu1 }
 0x276   :  { %1109 = vst [vmem:[%s2129_s10 + $0x28] sm:$0xff] %v1550_v17  ;;  %v1588_v28 = vmul.f32 %v1113_v20, %v1550_v17  ;;  %v1591_v29 = vmul.f32 %v1117_v21, %v1550_v17  ;;  %v1594_v30 = vmul.f32 %v1121_v22, %v1550_v17  ;;  %v1686_v61 = vmul.f32 %v1119_v55, %v1556_v18  ;;  %v502_v22 = vld [vmem:[%s2130_s0 + $0x18] sm:$0xff] }
 0x277   :  { %1111 = vst [vmem:[%s2129_s10 + $0x38] sm:$0xff] %v1556_v18  ;;  %v1722_v11 = vmul.f32 %v1115_v4, %v1556_v18 }
 0x280   :  { %v420_v19 = vpop.f32.mrf.mxu2 }
 0x281   :  { %495 = vst [vmem:[%s2129_s10] sm:$0xff] %v420_v19  ;;  %v1637_v43 = vmul.f32 %v499_v37, %v420_v19  ;;  %v1639_v44 = vmul.f32 %v503_v38, %v420_v19  ;;  %v1641_v46 = vmul.f32 %v507_v39, %v420_v19  ;;  %v1698_v2 = vmul.f32 %v511_v59, %v420_v19 }
 0x288   :  { %v1583_v26 = vpop.f32.mrf.mxu2  ;;  %v1585_v27 = vpop.f32.mrf.mxu3 }
 0x289   :  { %497 = vst [vmem:[%s2129_s10 + $0x10] sm:$0xff] %v1583_v26  ;;  %v1605_v31 = vmul.f32 %v1112_v23, %v1585_v27  ;;  %v1608_v32 = vmul.f32 %v1116_v24, %v1585_v27  ;;  %v1611_v33 = vmul.f32 %v1120_v25, %v1585_v27  ;;  %v1691_v0 = vmul.f32 %v505_v57, %v1583_v26  ;;  %v1122_v23 = vld [vmem:[%s2130_s0 + $0xd0] sm:$0xff]  ;;  %v1123_v24 = vld [vmem:[%s2130_s0 + $0xd8] sm:$0xff] }
 0x28a   :  { %1108 = vst [vmem:[%s2129_s10 + $0x20] sm:$0xff] %v1585_v27  ;;  %v1735_v16 = vmul.f32 %v513_v12, %v1583_v26  ;;  %v1740_v20 = vmul.f32 %v509_v13, %v1583_v26  ;;  %v1770_v39 = vmul.f32 %v1123_v24, %v1556_v18 }
 0x28b   :  { %v866_v34 = vadd.f32 %v1594_v30, %v1611_v33  ;;  %v860_v35 = vadd.f32 %v1591_v29, %v1608_v32  ;;  %v854_v36 = vadd.f32 %v1588_v28, %v1605_v31 }
 0x28d   :  { %867 = vadd.xlane.f32.xlu0 %v866_v34  ;;  %861 = vadd.xlane.f32.xlu1 %v860_v35  ;;  %v1124_v34 = vld [vmem:[%s2130_s0 + $0xe0] sm:$0xff]  ;;  %v1125_v35 = vld [vmem:[%s2130_s0 + $0xe8] sm:$0xff] }
 0x28e   :  { %855 = vadd.xlane.f32.xlu2 %v854_v36  ;;  %v501_v36 = vld [vmem:[%s2130_s0 + $0x10] sm:$0xff] }
 0x290   :  { %v443_v45 = vpop.f32.mrf.mxu2  ;;  %v1652_v50 = vpop.f32.mrf.mxu3 }
 0x291   :  { %496 = vst [vmem:[%s2129_s10 + $0x8] sm:$0xff] %v443_v45  ;;  %v1646_v47 = vmul.f32 %v500_v40, %v443_v45  ;;  %v1648_v48 = vmul.f32 %v504_v41, %v443_v45  ;;  %v1650_v49 = vmul.f32 %v508_v42, %v443_v45  ;;  %v1683_v60 = vmul.f32 %v1118_v54, %v1652_v50 }
 0x292   :  { %1110 = vst [vmem:[%s2129_s10 + $0x30] sm:$0xff] %v1652_v50  ;;  %v1688_v62 = vmul.f32 %v512_v56, %v443_v45  ;;  %v1719_v10 = vmul.f32 %v1114_v3, %v1652_v50  ;;  %v1767_v38 = vmul.f32 %v1122_v23, %v1652_v50  ;;  %v1773_v40 = vmul.f32 %v1124_v34, %v1585_v27  ;;  %v1127_v27 = vld [vmem:[%s2130_s0 + $0xf8] sm:$0xff] }
 0x293   :  { %v575_v51 = vadd.f32 %v1650_v49, %v1641_v46  ;;  %v569_v52 = vadd.f32 %v1648_v48, %v1639_v44  ;;  %v563_v53 = vadd.f32 %v1646_v47, %v1637_v43  ;;  %v863_v5 = vadd.f32 %v1686_v61, %v1683_v60 }
 0x294   :  { %v581_v7 = vadd.f32 %v1688_v62, %v1698_v2  ;;  %v857_v19 = vadd.f32 %v1722_v11, %v1719_v10  ;;  %v1776_v41 = vmul.f32 %v1125_v35, %v1550_v17  ;;  %v1779_v42 = vmul.f32 %v501_v36, %v1583_v26 }
 0x295   :  { %570 = vadd.xlane.f32.xlu1 %v569_v52  ;;  %564 = vadd.xlane.f32.xlu0 %v563_v53  ;;  %v869_v45 = vadd.f32 %v1770_v39, %v1767_v38  ;;  %v1126_v52 = vld [vmem:[%s2130_s0 + $0xf0] sm:$0xff]  ;;  %v1797_v53 = vmul.f32 %v1127_v27, %v1556_v18 }
 0x296   :  { %576 = vadd.xlane.f32.xlu2 %v575_v51  ;;  %v872_v17 = vadd.f32 %v1776_v41, %v1773_v40  ;;  %v1794_v26 = vmul.f32 %v1126_v52, %v1652_v50 }
 0x298   :  { %v446_v63 = vpop.f32.mrf.mxu2  ;;  %v875_v54 = vadd.f32 %v1797_v53, %v1794_v26 }
 0x299   :  { %498 = vst [vmem:[%s2129_s10 + $0x18] sm:$0xff] %v446_v63  ;;  %v1696_v1 = vmul.f32 %v506_v58, %v446_v63  ;;  %v1730_v14 = vmul.f32 %v514_v8, %v446_v63  ;;  %v1732_v15 = vmul.f32 %v510_v9, %v446_v63  ;;  %v1764_v37 = vmul.f32 %v502_v22, %v446_v63 }
 0x29b   :  { %v572_v6 = vadd.f32 %v1696_v1, %v1691_v0  ;;  %v584_v21 = vadd.f32 %v1730_v14, %v1735_v16  ;;  %v578_v25 = vadd.f32 %v1732_v15, %v1740_v20  ;;  %v566_v51 = vadd.f32 %v1764_v37, %v1779_v42 }
 0x29d   :  { %573 = vadd.xlane.f32.xlu1 %v572_v6  ;;  %582 = vadd.xlane.f32.xlu0 %v581_v7 }
 0x29e   :  { %864 = vadd.xlane.f32.xlu2 %v863_v5 }
 0x2a5   :  { %585 = vadd.xlane.f32.xlu1 %v584_v21  ;;  %858 = vadd.xlane.f32.xlu0 %v857_v19 }
 0x2a6   :  { %579 = vadd.xlane.f32.xlu2 %v578_v25 }
 0x2ad   :  { %870 = vadd.xlane.f32.xlu1 %v869_v45  ;;  %567 = vadd.xlane.f32.xlu0 %v566_v51 }
 0x2ae   :  { %873 = vadd.xlane.f32.xlu2 %v872_v17 }
 0x2b5   :  { %876 = vadd.xlane.f32.xlu0 %v875_v54 }
 0x300   :  { %v868_v55 = vpop.xlane.xlu0 %867  ;;  %v862_v56 = vpop.xlane.xlu1 %861 }
 0x301   :  { %v856_v57 = vpop.xlane.xlu2 %855 }
 0x308   :  { %v571_v58 = vpop.xlane.xlu1 %570  ;;  %v565_v59 = vpop.xlane.xlu0 %564 }
 0x309   :  { %v577_v63 = vpop.xlane.xlu2 %576 }
 0x310   :  { %v574_v3 = vpop.xlane.xlu1 %573  ;;  %v583_v4 = vpop.xlane.xlu0 %582 }
 0x311   :  { %v865_v5 = vpop.xlane.xlu2 %864  ;;  %v594_v6 = vadd.f32 %v574_v3, %v571_v58 }
 0x312   :  { %v885_v7 = vadd.f32 %v865_v5, %v862_v56 }
 0x313   :  { %v595_v8 = vrot.slane %v594_v6, 4 }
 0x314   :  { %v886_v50 = vrot.slane %v885_v7, 4 }
 0x315   :  { %v596_v12 = vadd.f32 %v595_v8, %v594_v6 }
 0x316   :  { %v887_v9 = vadd.f32 %v886_v50, %v885_v7 }
 0x317   :  { %v597_v35 = vrot.slane %v596_v12, 2 }
 0x318   :  { %v888_v18 = vrot.slane %v887_v9, 2  ;;  %v586_v13 = vpop.xlane.xlu1 %585  ;;  %v859_v19 = vpop.xlane.xlu0 %858 }
 0x319   :  { %v580_v21 = vpop.xlane.xlu2 %579  ;;  %v878_v22 = vadd.f32 %v859_v19, %v856_v57  ;;  %v608_v45 = vadd.f32 %v586_v13, %v583_v4  ;;  %v598_v56 = vadd.f32 %v597_v35, %v596_v12 }
 0x31a   :  { %v889_v23 = vadd.f32 %v888_v18, %v887_v9  ;;  %v601_v24 = vadd.f32 %v580_v21, %v577_v63 }
 0x31b   :  { %v879_v25 = vrot.slane %v878_v22, 4  ;;  %v609_v58 = vrot.slane %v608_v45, 4  ;;  %v599_v13 = vrot.slane %v598_v56, 1 }
 0x31c   :  { %v890_v34 = vrot.slane %v889_v23, 1  ;;  %v602_v36 = vrot.slane %v601_v24, 4 }
 0x31d   :  { %v880_v51 = vadd.f32 %v879_v25, %v878_v22  ;;  %v610_v19 = vadd.f32 %v609_v58, %v608_v45 }
 0x31e   :  { %v891_v52 = vadd.f32 %v890_v34, %v889_v23  ;;  %v603_v27 = vadd.f32 %v602_v36, %v601_v24  ;;  %v600_v34 = vadd.f32 %v599_v13, %v598_v56 }
 0x31f   :  { %v881_v17 = vrot.slane %v880_v51, 2  ;;  %v611_v35 = vrot.slane %v610_v19, 2 }
 0x320   :  { %v907_v54 = vmul.f32 0.00024414063, %v891_v52  ;;  %v871_v3 = vpop.xlane.xlu1 %870  ;;  %v568_v5 = vpop.xlane.xlu0 %567  ;;  %v604_v57 = vrot.slane %v603_v27, 2 }
 0x321   :  { %v882_v6 = vadd.f32 %v881_v17, %v880_v51  ;;  %v892_v7 = vadd.f32 %v871_v3, %v868_v55  ;;  %v587_v50 = vadd.f32 %v568_v5, %v565_v59  ;;  %v874_v36 = vpop.xlane.xlu2 %873  ;;  %v612_v13 = vadd.f32 %v611_v35, %v610_v19 }
 0x322   :  { %v1802_v63 = vsub.f32 %v1608_v32, %v907_v54  ;;  %v1805_v8 = vsub.f32 %v1591_v29, %v907_v54  ;;  %v605_v23 = vadd.f32 %v604_v57, %v603_v27 }
 0x323   :  { %v883_v4 = vrot.slane %v882_v6, 1  ;;  %v893_v9 = vrot.slane %v892_v7, 4  ;;  %v588_v18 = vrot.slane %v587_v50, 4 }
 0x324   :  { %v930_v12 = vmul.f32 %v1802_v63, %v1802_v63  ;;  %v931_v21 = vmul.f32 %v1805_v8, %v1805_v8  ;;  %v606_v3 = vrot.slane %v605_v23, 1 }
 0x325   :  { %v884_v55 = vadd.f32 %v883_v4, %v882_v6  ;;  %v894_v59 = vadd.f32 %v893_v9, %v892_v7  ;;  %v589_v22 = vadd.f32 %v588_v18, %v587_v50  ;;  %v1835_v18 = vsub.f32 %v1686_v61, %v907_v54 }
 0x326   :  { %v948_v32 = vadd.f32 %v931_v21, %v930_v12 }
 0x327   :  { %v906_v24 = vmul.f32 0.00024414063, %v884_v55  ;;  %v895_v25 = vrot.slane %v894_v59, 2  ;;  %v590_v29 = vrot.slane %v589_v22, 2 }
 0x328   :  { %949 = vadd.xlane.f32.xlu2 %v948_v32  ;;  %v877_v51 = vpop.xlane.xlu0 %876 }
 0x329   :  { %v896_v45 = vadd.f32 %v895_v25, %v894_v59  ;;  %v591_v52 = vadd.f32 %v590_v29, %v589_v22  ;;  %v899_v17 = vadd.f32 %v877_v51, %v874_v36  ;;  %v1812_v58 = vsub.f32 %v1719_v10, %v906_v24 }
 0x32a   :  { %v1815_v5 = vsub.f32 %v1722_v11, %v906_v24  ;;  %v1818_v27 = vsub.f32 %v1605_v31, %v906_v24  ;;  %v1821_v6 = vsub.f32 %v1588_v28, %v906_v24  ;;  %v1832_v31 = vsub.f32 %v1683_v60, %v907_v54 }
 0x32b   :  { %v897_v56 = vrot.slane %v896_v45, 1  ;;  %v592_v7 = vrot.slane %v591_v52, 1  ;;  %v900_v50 = vrot.slane %v899_v17, 4  ;;  %v928_v57 = vmul.f32 %v1812_v58, %v1812_v58 }
 0x32c   :  { %v929_v10 = vmul.f32 %v1815_v5, %v1815_v5  ;;  %v926_v4 = vmul.f32 %v1818_v27, %v1818_v27  ;;  %v927_v11 = vmul.f32 %v1821_v6, %v1821_v6  ;;  %v607_v59 = vadd.f32 %v606_v3, %v605_v23 }
 0x32d   :  { %v898_v28 = vadd.f32 %v897_v56, %v896_v45  ;;  %v593_v9 = vadd.f32 %v592_v7, %v591_v52  ;;  %v901_v12 = vadd.f32 %v900_v50, %v899_v17  ;;  %v616_v24 = vmul.f32 0.00024414063, %v600_v34 }
 0x32e   :  { %v945_v21 = vadd.f32 %v929_v10, %v928_v57  ;;  %v942_v55 = vadd.f32 %v927_v11, %v926_v4  ;;  %v932_v60 = vmul.f32 %v1832_v31, %v1832_v31  ;;  %v933_v54 = vmul.f32 %v1835_v18, %v1835_v18 }
 0x32f   :  { %v1837_v22 = vmul.f32 0.00024414063, %v898_v28  ;;  %v615_v32 = vmul.f32 0.00024414063, %v593_v9  ;;  %v613_v23 = vrot.slane %v612_v13, 1  ;;  %v902_v29 = vrot.slane %v901_v12, 2 }
 0x330   :  { %946 = vadd.xlane.f32.xlu1 %v945_v21  ;;  %943 = vadd.xlane.f32.xlu0 %v942_v55  ;;  %v617_v35 = vmul.f32 0.00024414063, %v607_v59  ;;  %v951_v45 = vadd.f32 %v933_v54, %v932_v60  ;;  %v1866_v52 = vsub.f32 %v1639_v44, %v616_v24  ;;  %v1902_v55 = vsub.f32 %v1691_v0, %v616_v24 }
 0x331   :  { %v1843_v25 = vsub.f32 %v1611_v33, %v1837_v22  ;;  %v1847_v61 = vsub.f32 %v1594_v30, %v1837_v22  ;;  %v1852_v19 = vsub.f32 %v1779_v42, %v615_v32  ;;  %v1855_v34 = vsub.f32 %v1764_v37, %v615_v32 }
 0x332   :  { %v1869_v37 = vsub.f32 %v1648_v48, %v616_v24  ;;  %v903_v17 = vadd.f32 %v902_v29, %v901_v12  ;;  %v1872_v56 = vsub.f32 %v1637_v43, %v615_v32  ;;  %v1875_v7 = vsub.f32 %v1646_v47, %v615_v32 }
 0x333   :  { %v934_v33 = vmul.f32 %v1843_v25, %v1843_v25  ;;  %v935_v36 = vmul.f32 %v1847_v61, %v1847_v61  ;;  %v637_v30 = vmul.f32 %v1852_v19, %v1852_v19  ;;  %v638_v51 = vmul.f32 %v1855_v34, %v1855_v34 }
 0x334   :  { %v614_v50 = vadd.f32 %v613_v23, %v612_v13  ;;  %v1878_v57 = vsub.f32 %v1641_v46, %v617_v35  ;;  %v1881_v10 = vsub.f32 %v1650_v49, %v617_v35  ;;  %v639_v44 = vmul.f32 %v1866_v52, %v1866_v52 }
 0x335   :  { %v954_v42 = vadd.f32 %v935_v36, %v934_v33  ;;  %v654_v3 = vadd.f32 %v638_v51, %v637_v30  ;;  %v640_v43 = vmul.f32 %v1869_v37, %v1869_v37  ;;  %v904_v48 = vrot.slane %v903_v17, 1 }
 0x336   :  { %v635_v47 = vmul.f32 %v1872_v56, %v1872_v56  ;;  %v636_v46 = vmul.f32 %v1875_v7, %v1875_v7  ;;  %v618_v4 = vmul.f32 0.00024414063, %v614_v50  ;;  %v643_v49 = vmul.f32 %v1878_v57, %v1878_v57 }
 0x337   :  { %655 = vadd.xlane.f32.xlu2 %v654_v3  ;;  %v644_v11 = vmul.f32 %v1881_v10, %v1881_v10  ;;  %v657_v28 = vadd.f32 %v640_v43, %v639_v44  ;;  %v1896_v9 = vsub.f32 %v1740_v20, %v617_v35  ;;  %v1899_v13 = vsub.f32 %v1732_v15, %v617_v35 }
 0x338   :  { %955 = vadd.xlane.f32.xlu1 %v954_v42  ;;  %952 = vadd.xlane.f32.xlu0 %v951_v45  ;;  %v905_v12 = vadd.f32 %v904_v48, %v903_v17  ;;  %v651_v21 = vadd.f32 %v636_v46, %v635_v47  ;;  %v1905_v59 = vsub.f32 %v1696_v1, %v616_v24 }
 0x339   :  { %v663_v32 = vadd.f32 %v644_v11, %v643_v49  ;;  %v1908_v60 = vsub.f32 %v1735_v16, %v618_v4  ;;  %v1911_v54 = vsub.f32 %v1730_v14, %v618_v4  ;;  %v645_v15 = vmul.f32 %v1896_v9, %v1896_v9 }
 0x33a   :  { %v646_v0 = vmul.f32 %v1899_v13, %v1899_v13  ;;  %v909_v20 = vmul.f32 0.00024414063, %v905_v12  ;;  %v641_v1 = vmul.f32 %v1902_v55, %v1902_v55  ;;  %v642_v16 = vmul.f32 %v1905_v59, %v1905_v59 }
 0x33b   :  { %v649_v14 = vmul.f32 %v1908_v60, %v1908_v60  ;;  %v650_v24 = vmul.f32 %v1911_v54, %v1911_v54  ;;  %v1926_v29 = vsub.f32 %v1698_v2, %v618_v4  ;;  %v1929_v33 = vsub.f32 %v1688_v62, %v618_v4 }
 0x33c   :  { %v666_v23 = vadd.f32 %v646_v0, %v645_v15  ;;  %v660_v35 = vadd.f32 %v642_v16, %v641_v1  ;;  %v1932_v36 = vsub.f32 %v1773_v40, %v909_v20  ;;  %v1935_v30 = vsub.f32 %v1776_v41, %v909_v20 }
 0x33d   :  { %v672_v51 = vadd.f32 %v650_v24, %v649_v14  ;;  %v1939_v42 = vsub.f32 %v1767_v38, %v1837_v22  ;;  %v1943_v45 = vsub.f32 %v1770_v39, %v1837_v22  ;;  %v647_v62 = vmul.f32 %v1926_v29, %v1926_v29 }
 0x33e   :  { %v648_v2 = vmul.f32 %v1929_v33, %v1929_v33  ;;  %v938_v40 = vmul.f32 %v1932_v36, %v1932_v36  ;;  %v939_v38 = vmul.f32 %v1935_v30, %v1935_v30  ;;  %v1958_v3 = vsub.f32 %v1794_v26, %v909_v20 }
 0x33f   :  { %664 = vadd.xlane.f32.xlu2 %v663_v32  ;;  %v936_v41 = vmul.f32 %v1939_v42, %v1939_v42  ;;  %v937_v39 = vmul.f32 %v1943_v45, %v1943_v45  ;;  %v1961_v50 = vsub.f32 %v1797_v53, %v909_v20 }
 0x340   :  { %658 = vadd.xlane.f32.xlu0 %v657_v28  ;;  %652 = vadd.xlane.f32.xlu1 %v651_v21  ;;  %v669_v22 = vadd.f32 %v648_v2, %v647_v62  ;;  %v960_v17 = vadd.f32 %v939_v38, %v938_v40  ;;  %v940_v43 = vmul.f32 %v1958_v3, %v1958_v3 }
 0x341   :  { %v957_v44 = vadd.f32 %v937_v39, %v936_v41  ;;  %v941_v48 = vmul.f32 %v1961_v50, %v1961_v50 }
 0x343   :  { %v963_v47 = vadd.f32 %v941_v48, %v940_v43 }
 0x347   :  { %673 = vadd.xlane.f32.xlu2 %v672_v51 }
 0x348   :  { %667 = vadd.xlane.f32.xlu0 %v666_v23  ;;  %661 = vadd.xlane.f32.xlu1 %v660_v35 }
 0x34f   :  { %958 = vadd.xlane.f32.xlu2 %v957_v44 }
 0x350   :  { %670 = vadd.xlane.f32.xlu1 %v669_v22  ;;  %961 = vadd.xlane.f32.xlu0 %v960_v17 }
 0x358   :  { %964 = vadd.xlane.f32.xlu1 %v963_v47 }
 0x39b   :  { %v950_v49 = vpop.xlane.xlu2 %949 }
 0x3a3   :  { %v947_v46 = vpop.xlane.xlu1 %946  ;;  %v944_v4 = vpop.xlane.xlu0 %943 }
 0x3a4   :  { %v966_v26 = vadd.f32 %v947_v46, %v944_v4 }
 0x3a6   :  { %v967_v11 = vrot.slane %v966_v26, 4 }
 0x3a8   :  { %v968_v28 = vadd.f32 %v967_v11, %v966_v26 }
 0x3aa   :  { %v969_v53 = vrot.slane %v968_v28, 2  ;;  %v656_v15 = vpop.xlane.xlu2 %655 }
 0x3ab   :  { %v956_v12 = vpop.xlane.xlu1 %955  ;;  %v953_v21 = vpop.xlane.xlu0 %952 }
 0x3ac   :  { %v970_v32 = vadd.f32 %v969_v53, %v968_v28  ;;  %v973_v0 = vadd.f32 %v953_v21, %v950_v49 }
 0x3ae   :  { %v971_v20 = vrot.slane %v970_v32, 1  ;;  %v974_v1 = vrot.slane %v973_v0, 4 }
 0x3b0   :  { %v972_v16 = vadd.f32 %v971_v20, %v970_v32  ;;  %v975_v14 = vadd.f32 %v974_v1, %v973_v0 }
 0x3b2   :  { %v994_v24 = vmul.f32 0.00024414063, %v972_v16  ;;  %v976_v23 = vrot.slane %v975_v14, 2  ;;  %v665_v40 = vpop.xlane.xlu2 %664 }
 0x3b3   :  { %v653_v35 = vpop.xlane.xlu1 %652  ;;  %v659_v51 = vpop.xlane.xlu0 %658 }
 0x3b4   :  { %v998_v62 = vadd.f32 1e-05, %v994_v24  ;;  %v977_v2 = vadd.f32 %v976_v23, %v975_v14  ;;  %v675_v38 = vadd.f32 %v656_v15, %v653_v35 }
 0x3b6   :  { %1181 = vrsqrt.f32 %v998_v62  ;;  %v978_v41 = vrot.slane %v977_v2, 1  ;;  %v676_v39 = vrot.slane %v675_v38, 4  ;;  %vm1008_vm10 = vweird.f32 %v998_v62 }
 0x3b8   :  { %v979_v22 = vadd.f32 %v978_v41, %v977_v2  ;;  %v677_v17 = vadd.f32 %v676_v39, %v675_v38 }
 0x3ba   :  { %v995_v44 = vmul.f32 0.00024414063, %v979_v22  ;;  %v678_v43 = vrot.slane %v677_v17, 2  ;;  %v674_v26 = vpop.xlane.xlu2 %673 }
 0x3bb   :  { %v662_v48 = vpop.xlane.xlu1 %661  ;;  %v668_v47 = vpop.xlane.xlu0 %667 }
 0x3bc   :  { %v1182_v46 = vpop.eup %1181  ;;  %v1967_v4 = vadd.f32 1e-05, %v995_v44  ;;  %v679_v49 = vadd.f32 %v678_v43, %v677_v17  ;;  %v682_v11 = vadd.f32 %v662_v48, %v659_v51  ;;  %v689_v28 = vadd.f32 %v668_v47, %v665_v40 }
 0x3bd   :  { %v1003_v53 = vmul.f32 %v1182_v46, %v998_v62  ;;  %vm1009_vm9 = vweird.f32 %v1182_v46 }
 0x3be   :  { %1183 = vrsqrt.f32 %v1967_v4  ;;  %v680_v21 = vrot.slane %v679_v49, 1  ;;  %v683_v32 = vrot.slane %v682_v11, 4  ;;  %v690_v0 = vrot.slane %v689_v28, 4  ;;  %vm1010_vm11 = vmor %vm1008_vm10, %vm1009_vm9 }
 0x3bf   :  { %v1004_v15 = vmul.f32 %v1182_v46, %v1003_v53  ;;  %vm1018_vm13 = vweird.f32 %v1967_v4 }
 0x3c0   :  { %v681_v20 = vadd.f32 %v680_v21, %v679_v49  ;;  %v684_v1 = vadd.f32 %v683_v32, %v682_v11  ;;  %v691_v14 = vadd.f32 %v690_v0, %v689_v28 }
 0x3c1   :  { %v1005_v16 = vmul.f32 0.5, %v1004_v15 }
 0x3c2   :  { %v703_v24 = vmul.f32 0.00024414063, %v681_v20  ;;  %v685_v23 = vrot.slane %v684_v1, 2  ;;  %v692_v2 = vrot.slane %v691_v14, 2  ;;  %v959_v39 = vpop.xlane.xlu2 %958 }
 0x3c3   :  { %v1006_v35 = vsub.f32 1.5, %v1005_v16  ;;  %v671_v38 = vpop.xlane.xlu1 %670  ;;  %v980_v47 = vadd.f32 %v959_v39, %v956_v12  ;;  %v962_v16 = vpop.xlane.xlu0 %961 }
 0x3c4   :  { %v1184_v41 = vpop.eup %1183  ;;  %v1970_v51 = vadd.f32 1e-05, %v703_v24  ;;  %v686_v40 = vadd.f32 %v685_v23, %v684_v1  ;;  %v696_v22 = vadd.f32 %v674_v26, %v671_v38  ;;  %v693_v43 = vadd.f32 %v692_v2, %v691_v14 }
 0x3c5   :  { %v1007_v17 = vmul.f32 %v1182_v46, %v1006_v35  ;;  %v1013_v44 = vmul.f32 %v1184_v41, %v1967_v4  ;;  %v981_v1 = vrot.slane %v980_v47, 4  ;;  %vm1019_vm12 = vweird.f32 %v1184_v41 }
 0x3c6   :  { %1185 = vrsqrt.f32 %v1970_v51  ;;  %v687_v48 = vrot.slane %v686_v40, 1  ;;  %v694_v28 = vrot.slane %v693_v43, 1  ;;  %v697_v53 = vrot.slane %v696_v22, 4  ;;  %vm1020_vm14 = vmor %vm1018_vm13, %vm1019_vm12 }
 0x3c7   :  { %v1011_v49 = vsel %vm1010_vm11, %v1182_v46, %v1007_v17  ;;  %v1014_v11 = vmul.f32 %v1184_v41, %v1013_v44  ;;  %vm717_vm0 = vweird.f32 %v1970_v51 }
 0x3c8   :  { %v1042_v21 = vmul.f32 %v1011_v49, %v1818_v27  ;;  %v1043_v32 = vmul.f32 %v1011_v49, %v1821_v6  ;;  %v1044_v26 = vmul.f32 %v1011_v49, %v1812_v58  ;;  %v1045_v62 = vmul.f32 %v1011_v49, %v1815_v5 }
 0x3c9   :  { %v1015_v15 = vmul.f32 0.5, %v1014_v11  ;;  %v688_v0 = vadd.f32 %v687_v48, %v686_v40  ;;  %v695_v20 = vadd.f32 %v694_v28, %v693_v43  ;;  %v698_v12 = vadd.f32 %v697_v53, %v696_v22 }
 0x3ca   :  { %1160 = vst [vmem:[%s2131_s9 + $0x80] sm:$0xff] %v1042_v21  ;;  %v982_v58 = vadd.f32 %v981_v1, %v980_v47 }
 0x3cb   :  { %1161 = vst [vmem:[%s2131_s9 + $0x88] sm:$0xff] %v1043_v32  ;;  %v1016_v27 = vsub.f32 1.5, %v1015_v15  ;;  %v704_v6 = vmul.f32 0.00024414063, %v688_v0  ;;  %v705_v46 = vmul.f32 0.00024414063, %v695_v20  ;;  %v965_v5 = vpop.xlane.xlu1 %964  ;;  %v699_v24 = vrot.slane %v698_v12, 2 }
 0x3cc   :  { %v1186_v14 = vpop.eup %1185  ;;  %1162 = vst [vmem:[%s2131_s9 + $0x90] sm:$0xff] %v1044_v26  ;;  %v987_v23 = vadd.f32 %v965_v5, %v962_v16  ;;  %v983_v39 = vrot.slane %v982_v58, 2 }
 0x3cd   :  { %1163 = vst [vmem:[%s2131_s9 + $0x98] sm:$0xff] %v1045_v62  ;;  %v1017_v35 = vmul.f32 %v1184_v41, %v1016_v27  ;;  %v712_v2 = vmul.f32 %v1186_v14, %v1970_v51  ;;  %v1992_v38 = vadd.f32 1e-05, %v704_v6  ;;  %v1995_v40 = vadd.f32 1e-05, %v705_v46 }
 0x3ce   :  { %v700_v22 = vadd.f32 %v699_v24, %v698_v12  ;;  %v988_v17 = vrot.slane %v987_v23, 4  ;;  %v984_v28 = vadd.f32 %v983_v39, %v982_v58  ;;  %vm718_vm15 = vweird.f32 %v1186_v14 }
 0x3cf   :  { %v1021_v44 = vsel %vm1020_vm14, %v1184_v41, %v1017_v35  ;;  %v713_v43 = vmul.f32 %v1186_v14, %v712_v2  ;;  %1187 = vrsqrt.f32 %v1992_v38  ;;  %vm719_vm1 = vmor %vm717_vm0, %vm718_vm15  ;;  %vm727_vm3 = vweird.f32 %v1992_v38 }
 0x3d0   :  { %v1046_v48 = vmul.f32 %v1021_v44, %v1802_v63  ;;  %v1047_v47 = vmul.f32 %v1021_v44, %v1805_v8  ;;  %v1048_v4 = vmul.f32 %v1021_v44, %v1832_v31  ;;  %v1049_v49 = vmul.f32 %v1021_v44, %v1835_v18 }
 0x3d1   :  { %v714_v11 = vmul.f32 0.5, %v713_v43  ;;  %1189 = vrsqrt.f32 %v1995_v40  ;;  %v701_v41 = vrot.slane %v700_v22, 1  ;;  %v989_v53 = vadd.f32 %v988_v17, %v987_v23 }
 0x3d2   :  { %1164 = vst [vmem:[%s2131_s9 + $0xa0] sm:$0xff] %v1046_v48  ;;  %v985_v8 = vrot.slane %v984_v28, 1  ;;  %vm737_vm6 = vweird.f32 %v1995_v40 }
 0x3d3   :  { %1165 = vst [vmem:[%s2131_s9 + $0xa8] sm:$0xff] %v1047_v47  ;;  %v715_v63 = vsub.f32 1.5, %v714_v11  ;;  %v702_v31 = vadd.f32 %v701_v41, %v700_v22  ;;  %v990_v18 = vrot.slane %v989_v53, 2 }
 0x3d4   :  { %1166 = vst [vmem:[%s2131_s9 + $0xb0] sm:$0xff] %v1048_v4  ;;  %v986_v26 = vadd.f32 %v985_v8, %v984_v28 }
 0x3d5   :  { %v1188_v21 = vpop.eup %1187  ;;  %1167 = vst [vmem:[%s2131_s9 + $0xb8] sm:$0xff] %v1049_v49  ;;  %v716_v32 = vmul.f32 %v1186_v14, %v715_v63  ;;  %v706_v15 = vmul.f32 0.00024414063, %v702_v31  ;;  %v991_v0 = vadd.f32 %v990_v18, %v989_v53 }
 0x3d6   :  { %v722_v62 = vmul.f32 %v1188_v21, %v1992_v38  ;;  %v996_v12 = vmul.f32 0.00024414063, %v986_v26  ;;  %vm728_vm2 = vweird.f32 %v1188_v21 }
 0x3d7   :  { %v1190_v20 = vpop.eup %1189  ;;  %v720_v1 = vsel %vm719_vm1, %v1186_v14, %v716_v32  ;;  %v710_v24 = vadd.f32 1e-05, %v706_v15  ;;  %v992_v23 = vrot.slane %v991_v0, 1  ;;  %vm729_vm5 = vmor %vm727_vm3, %vm728_vm2 }
 0x3d8   :  { %v751_v27 = vmul.f32 %v720_v1, %v1872_v56  ;;  %v752_v6 = vmul.f32 %v720_v1, %v1875_v7  ;;  %v753_v46 = vmul.f32 %v720_v1, %v1852_v19  ;;  %v754_v58 = vmul.f32 %v720_v1, %v1855_v34 }
 0x3d9   :  { %v723_v16 = vmul.f32 %v1188_v21, %v722_v62  ;;  %v732_v51 = vmul.f32 %v1190_v20, %v1995_v40  ;;  %v1000_v5 = vadd.f32 1e-05, %v996_v12  ;;  %v993_v19 = vadd.f32 %v992_v23, %v991_v0 }
 0x3da   :  { %767 = vst [vmem:[%s2131_s9] sm:$0xff] %v751_v27  ;;  %vm738_vm4 = vweird.f32 %v1190_v20  ;;  %vm747_vm12 = vweird.f32 %v710_v24 }
 0x3db   :  { %768 = vst [vmem:[%s2131_s9 + $0x8] sm:$0xff] %v752_v6  ;;  %v724_v56 = vmul.f32 0.5, %v723_v16  ;;  %v733_v7 = vmul.f32 %v1190_v20, %v732_v51  ;;  %1191 = vrsqrt.f32 %v1000_v5  ;;  %v997_v35 = vmul.f32 0.00024414063, %v993_v19  ;;  %vm739_vm7 = vmor %vm737_vm6, %vm738_vm4 }
 0x3dc   :  { %769 = vst [vmem:[%s2131_s9 + $0x10] sm:$0xff] %v753_v46  ;;  %1193 = vrsqrt.f32 %v710_v24  ;;  %vm1028_vm10 = vweird.f32 %v1000_v5 }
 0x3dd   :  { %770 = vst [vmem:[%s2131_s9 + $0x18] sm:$0xff] %v754_v58  ;;  %v725_v34 = vsub.f32 1.5, %v724_v56  ;;  %v734_v14 = vmul.f32 0.5, %v733_v7  ;;  %v2036_v43 = vadd.f32 1e-05, %v997_v35 }
 0x3df   :  { %v726_v2 = vmul.f32 %v1188_v21, %v725_v34  ;;  %v735_v39 = vsub.f32 1.5, %v734_v14  ;;  %1195 = vrsqrt.f32 %v2036_v43  ;;  %vm1038_vm15 = vweird.f32 %v2036_v43 }
 0x3e1   :  { %v1192_v22 = vpop.eup %1191  ;;  %v730_v17 = vsel %vm729_vm5, %v1188_v21, %v726_v2  ;;  %v736_v44 = vmul.f32 %v1190_v20, %v735_v39 }
 0x3e2   :  { %v1194_v48 = vpop.eup %1193  ;;  %v755_v47 = vmul.f32 %v730_v17, %v1866_v52  ;;  %v756_v4 = vmul.f32 %v730_v17, %v1869_v37  ;;  %v757_v49 = vmul.f32 %v730_v17, %v1902_v55  ;;  %v758_v38 = vmul.f32 %v730_v17, %v1905_v59 }
 0x3e3   :  { %v740_v11 = vsel %vm739_vm7, %v1190_v20, %v736_v44  ;;  %v1023_v28 = vmul.f32 %v1192_v22, %v1000_v5  ;;  %v742_v41 = vmul.f32 %v1194_v48, %v710_v24  ;;  %vm1029_vm8 = vweird.f32 %v1192_v22 }
 0x3e4   :  { %771 = vst [vmem:[%s2131_s9 + $0x20] sm:$0xff] %v755_v47  ;;  %v759_v40 = vmul.f32 %v740_v11, %v1878_v57  ;;  %v760_v52 = vmul.f32 %v740_v11, %v1881_v10  ;;  %v761_v59 = vmul.f32 %v740_v11, %v1896_v9  ;;  %v762_v57 = vmul.f32 %v740_v11, %v1899_v13  ;;  %vm1030_vm11 = vmor %vm1028_vm10, %vm1029_vm8 }
 0x3e5   :  { %772 = vst [vmem:[%s2131_s9 + $0x28] sm:$0xff] %v756_v4  ;;  %v1024_v37 = vmul.f32 %v1192_v22, %v1023_v28  ;;  %v743_v55 = vmul.f32 %v1194_v48, %v742_v41  ;;  %vm748_vm9 = vweird.f32 %v1194_v48  ;;  %v1196_v9 = vpop.eup %1195 }
 0x3e6   :  { %773 = vst [vmem:[%s2131_s9 + $0x30] sm:$0xff] %v757_v49  ;;  %vm749_vm13 = vmor %vm747_vm12, %vm748_vm9  ;;  %v1033_v18 = vmul.f32 %v1196_v9, %v2036_v43  ;;  %vm1039_vm14 = vweird.f32 %v1196_v9 }
 0x3e7   :  { %774 = vst [vmem:[%s2131_s9 + $0x38] sm:$0xff] %v758_v38  ;;  %v1025_v53 = vmul.f32 0.5, %v1024_v37  ;;  %v744_v63 = vmul.f32 0.5, %v743_v55  ;;  %vm1040_vm0 = vmor %vm1038_vm15, %vm1039_vm14 }
 0x3e8   :  { %775 = vst [vmem:[%s2131_s9 + $0x40] sm:$0xff] %v759_v40  ;;  %v1034_v1 = vmul.f32 %v1196_v9, %v1033_v18 }
 0x3e9   :  { %776 = vst [vmem:[%s2131_s9 + $0x48] sm:$0xff] %v760_v52  ;;  %v1026_v10 = vsub.f32 1.5, %v1025_v53  ;;  %v745_v8 = vsub.f32 1.5, %v744_v63 }
 0x3ea   :  { %777 = vst [vmem:[%s2131_s9 + $0x50] sm:$0xff] %v761_v59 }
 0x3eb   :  { %778 = vst [vmem:[%s2131_s9 + $0x58] sm:$0xff] %v762_v57  ;;  %v1027_v13 = vmul.f32 %v1192_v22, %v1026_v10  ;;  %v746_v31 = vmul.f32 %v1194_v48, %v745_v8 }
 0x3ed   :  { %v1031_v21 = vsel %vm1030_vm11, %v1192_v22, %v1027_v13  ;;  %v750_v32 = vsel %vm749_vm13, %v1194_v48, %v746_v31 }
 0x3ee   :  { %v1050_v26 = vmul.f32 %v1031_v21, %v1843_v25  ;;  %v1051_v62 = vmul.f32 %v1031_v21, %v1847_v61  ;;  %v1052_v15 = vmul.f32 %v1031_v21, %v1939_v42  ;;  %v1053_v0 = vmul.f32 %v1031_v21, %v1943_v45 }
 0x3ef   :  { %v763_v20 = vmul.f32 %v750_v32, %v1926_v29  ;;  %v764_v12 = vmul.f32 %v750_v32, %v1929_v33  ;;  %v765_v25 = vmul.f32 %v750_v32, %v1908_v60  ;;  %v1035_v61 = vmul.f32 0.5, %v1034_v1 }
 0x3f0   :  { %1168 = vst [vmem:[%s2131_s9 + $0xc0] sm:$0xff] %v1050_v26  ;;  %v766_v29 = vmul.f32 %v750_v32, %v1911_v54 }
 0x3f1   :  { %1169 = vst [vmem:[%s2131_s9 + $0xc8] sm:$0xff] %v1051_v62  ;;  %v1036_v42 = vsub.f32 1.5, %v1035_v61 }
 0x3f2   :  { %1170 = vst [vmem:[%s2131_s9 + $0xd0] sm:$0xff] %v1052_v15 }
 0x3f3   :  { %1171 = vst [vmem:[%s2131_s9 + $0xd8] sm:$0xff] %v1053_v0  ;;  %v1037_v60 = vmul.f32 %v1196_v9, %v1036_v42 }
 0x3f4   :  { %779 = vst [vmem:[%s2131_s9 + $0x60] sm:$0xff] %v763_v20 }
 0x3f5   :  { %780 = vst [vmem:[%s2131_s9 + $0x68] sm:$0xff] %v764_v12  ;;  %v1041_v54 = vsel %vm1040_vm0, %v1196_v9, %v1037_v60 }
 0x3f6   :  { %781 = vst [vmem:[%s2131_s9 + $0x70] sm:$0xff] %v765_v25  ;;  %v1054_v33 = vmul.f32 %v1041_v54, %v1932_v36  ;;  %v1055_v45 = vmul.f32 %v1041_v54, %v1935_v30  ;;  %v1056_v27 = vmul.f32 %v1041_v54, %v1958_v3  ;;  %v1057_v6 = vmul.f32 %v1041_v54, %v1961_v50 }
 0x3f7   :  { %782 = vst [vmem:[%s2131_s9 + $0x78] sm:$0xff] %v766_v29 }
 0x3f8   :  { %1172 = vst [vmem:[%s2131_s9 + $0xe0] sm:$0xff] %v1054_v33 }
 0x3f9   :  { %1173 = vst [vmem:[%s2131_s9 + $0xe8] sm:$0xff] %v1055_v45 }
 0x3fa   :  { %1174 = vst [vmem:[%s2131_s9 + $0xf0] sm:$0xff] %v1056_v27 }
 0x3fb   :  { %1175 = vst [vmem:[%s2131_s9 + $0xf8] sm:$0xff] %v1057_v6 }

</bundles_post_ra>
